<compile_context>
chip_gen: v7x
topology: tpu7x:2x2x1
jax: 0.10.0
libtpu: 0.0.40
codegen_flags: <defaults>
</compile_context>

<pallas_src>
import jax
import jax.numpy as jnp
from jax.experimental import pallas as pl
from jax.experimental.pallas import tpu as pltpu

_VMEM = pl.BlockSpec(memory_space=pltpu.MemorySpace.VMEM)
_HL = 128          # padded hidden-lane width (6 cells * Hd, padded to one vreg)
_FP = 8            # padded feature lanes (7 real features + 1 zero pad)


# ----------------------------------------------------------------------------
# Fused forward kernel: 3x biLSTM + 3x DotAttention + hidden2tag + log_softmax
# ----------------------------------------------------------------------------
def _make_fused_kernel(T, Hd, tagset):
    HL = _HL
    FP = _FP
    f32 = jnp.float32
    bf16 = jnp.bfloat16

    def kernel(x_ref, win2_ref, whh_ref, wattn_ref, whead_ref, const_ref, out_ref):
        # ---- unpack the packed small constants (one DMA instead of three) ----
        cpk = const_ref[...]                       # (8, 512) f32
        b_all = cpk[0:1, :]                        # (1, 512) LSTM gate biases
        e_mat = cpk[1:4, 0:HL]                     # (3, 128) alpha -> lane broadcast
        b_head = cpk[4:5, 0:tagset]                # (1, tagset)

        # ---- hoisted input projection (f32, off the serial chain) ----
        # Row s is in the "step domain": forward cells consume x[s] (pre_f),
        # backward cells consume x[T-1-s] (pre_b read with a static index).
        x = x_ref[...]                                                   # (T, 8)
        win2 = win2_ref[...]                                             # (16, 512)
        pre_f = jnp.dot(x, win2[0:FP, :], preferred_element_type=f32) + b_all   # (T, 512)
        pre_b = jnp.dot(x, win2[FP:2 * FP, :], preferred_element_type=f32)      # (T, 512)

        # ---- batched bidirectional recurrence, fully unrolled (T static) ----
        # 6 (stream x direction) cells share one 128-lane state; whh is packed
        # block-diagonally so each step is ONE bf16 (1,128)@(128,512) matmul.
        # TODO(synk): pltpu.matmul_push_rhs/acc_lhs/pop could hold whh resident
        # in the MXU weight registers across the 8 steps; left to the compiler.
        whh_b = whh_ref[...]                       # (128, 512) bf16
        h = jnp.zeros((1, HL), f32)
        c = jnp.zeros((1, HL), f32)
        h_rows = []
        for s in range(T):
            g_lin = (pre_f[s:s + 1, :] + pre_b[T - 1 - s:T - s, :] +
                     jnp.dot(h.astype(bf16), whh_b, preferred_element_type=f32))  # (1, 512)
            # gate lane order [i | f | o | g]: contiguous sigmoid slab + tanh tail
            sig = jax.nn.sigmoid(g_lin[:, 0:3 * HL])        # (1, 384)
            i_g = sig[:, 0:HL]
            f_g = sig[:, HL:2 * HL]
            o_g = sig[:, 2 * HL:3 * HL]
            g_g = jnp.tanh(g_lin[:, 3 * HL:4 * HL])
            c = f_g * c + i_g * g_g                         # cell state stays f32
            h = o_g * jnp.tanh(c)
            h_rows.append(h)

        hs = jnp.concatenate(h_rows, axis=0)                # (T, 128) step domain
        hs_rev = jnp.concatenate(h_rows[::-1], axis=0)      # time reversal: register shuffle

        # ---- three DotAttention layers, batched: ONE fused logit matmul ----
        # logits[t, k] = <h_fwd_k(t), w_f_k> + <h_bwd_k(t), w_b_k>
        hs2 = jnp.concatenate([hs, hs_rev], axis=1).astype(bf16)        # (T, 256)
        logits = jnp.dot(hs2, wattn_ref[...], preferred_element_type=f32)  # (T, 3)
        m = jnp.max(logits, axis=0, keepdims=True)
        e = jnp.exp(logits - m)
        alphas = e / jnp.sum(e, axis=0, keepdims=True)      # (T, 3), exact division
        # lengths == T (no padding): the torch mask + renormalize is the identity.

        a_exp = jnp.dot(alphas, e_mat, preferred_element_type=f32)      # (T, 128)
        ctx_f = jnp.sum(a_exp * hs, axis=0, keepdims=True)      # fwd lanes valid
        ctx_b = jnp.sum(a_exp * hs_rev, axis=0, keepdims=True)  # bwd lanes valid
        ctx2 = jnp.concatenate([ctx_f, ctx_b], axis=1)           # (1, 256)

        # ---- hidden2tag (+invalid lanes masked by zero weight rows) + log_softmax
        tag = jnp.dot(ctx2, whead_ref[...], preferred_element_type=f32) + b_head
        sh = tag - jnp.max(tag, axis=1, keepdims=True)
        out_ref[...] = sh - jnp.log(jnp.sum(jnp.exp(sh), axis=1, keepdims=True))

    return kernel


def make_model_forward(T, hidden_dim, tagset_size):
    Hd = hidden_dim // 2
    assert 6 * Hd <= _HL, "6 * per-direction hidden must fit in one 128-lane vreg"
    kernel = _make_fused_kernel(T, Hd, tagset_size)

    @jax.jit
    def forward(slow_x, moderate_x, fast_x, pk):
        # Only remaining wrapper op: stack the 3 tiny streams to (T, 8).
        FT = slow_x.shape[1] + moderate_x.shape[1] + fast_x.shape[1]
        pad = jnp.zeros((T, _FP - FT), jnp.float32)
        x_pad = jnp.concatenate([slow_x, moderate_x, fast_x, pad], axis=1)   # (T, 8)
        return pl.pallas_call(
            kernel,
            out_shape=jax.ShapeDtypeStruct((1, tagset_size), jnp.float32),
            in_specs=[_VMEM] * 6,
            out_specs=_VMEM,
        )(x_pad, pk['win2'], pk['whh'], pk['w_attn'], pk['w_head2'], pk['const'])

    return forward


# ----------------------------------------------------------------------------
# One-time weight packing (raw torch-layout params -> kernel layout)
# ----------------------------------------------------------------------------
def pack_params(params, tagset_size, hidden_dim):
    Hd = hidden_dim // 2
    HL = _HL
    FP = _FP
    GL = 4 * HL
    streams = ('slow', 'moderate', 'fast')
    feat_sizes = [params[s]['wih_f'].shape[1] for s in streams]
    foffs = [0, feat_sizes[0], feat_sizes[0] + feat_sizes[1]]
    assert sum(feat_sizes) <= FP and 6 * Hd <= HL

    # torch gate order (i, f, g, o) -> kernel gate block order [i | f | o | g]
    gmap = (0, 1, 3, 2)

    win2 = jnp.zeros((2 * FP, GL), jnp.float32)     # rows [0,8): fwd, [8,16): bwd
    b_all = jnp.zeros((1, GL), jnp.float32)
    whh = jnp.zeros((HL, GL), jnp.float32)          # block-diagonal recurrent weights
    w_attn = jnp.zeros((2 * HL, 3), jnp.float32)    # stacked [waf; wab]
    e_mat = jnp.zeros((3, HL), jnp.float32)         # alpha -> per-lane broadcast
    w_head2 = jnp.zeros((2 * HL, tagset_size), jnp.float32)   # stacked [w_head_f; w_head_b]
    W = params['hid2tag_w']                         # (tagset, 3*hidden) torch layout

    for k, name in enumerate(streams):
        p = params[name]
        F, fo = feat_sizes[k], foffs[k]
        off_f = k * Hd
        off_b = 3 * Hd + k * Hd
        for q in range(4):                          # torch gate q: i, f, g, o
            gb = gmap[q]
            cf = gb * HL + off_f
            cb = gb * HL + off_b
            win2 = win2.at[fo:fo + F, cf:cf + Hd].set(p['wih_f'][q * Hd:(q + 1) * Hd, :].T)
            win2 = win2.at[FP + fo:FP + fo + F, cb:cb + Hd].set(p['wih_b'][q * Hd:(q + 1) * Hd, :].T)
            whh = whh.at[off_f:off_f + Hd, cf:cf + Hd].set(p['whh_f'][q * Hd:(q + 1) * Hd, :].T)
            whh = whh.at[off_b:off_b + Hd, cb:cb + Hd].set(p['whh_b'][q * Hd:(q + 1) * Hd, :].T)
            b_all = b_all.at[0, cf:cf + Hd].set(p['b_f'][0, q * Hd:(q + 1) * Hd])
            b_all = b_all.at[0, cb:cb + Hd].set(p['b_b'][0, q * Hd:(q + 1) * Hd])
        wa = params[name + '_attn_w']               # (1, 2*Hd) = [w_fwd | w_bwd]
        w_attn = w_attn.at[off_f:off_f + Hd, k].set(wa[0, 0:Hd])
        w_attn = w_attn.at[HL + off_b:HL + off_b + Hd, k].set(wa[0, Hd:2 * Hd])
        e_mat = e_mat.at[k, off_f:off_f + Hd].set(1.0)
        e_mat = e_mat.at[k, off_b:off_b + Hd].set(1.0)
        # hidden2tag: torch lane order [s_f,s_b,m_f,m_b,f_f,f_b] -> kernel
        # [ctx_f fwd lanes | ctx_b bwd lanes]; invalid lanes masked by zero rows.
        w_head2 = w_head2.at[off_f:off_f + Hd, :].set(W[:, k * 2 * Hd:k * 2 * Hd + Hd].T)
        w_head2 = w_head2.at[HL + off_b:HL + off_b + Hd, :].set(
            W[:, k * 2 * Hd + Hd:(k + 1) * 2 * Hd].T)

    # pack the small f32 constants into one array (one DMA)
    const = jnp.zeros((8, GL), jnp.float32)
    const = const.at[0, :].set(b_all[0])
    const = const.at[1:4, 0:HL].set(e_mat)
    const = const.at[4, 0:tagset_size].set(params['hid2tag_b'][0])

    return dict(
        win2=win2,                              # f32: accuracy, off the serial chain
        whh=whh.astype(jnp.bfloat16),           # bf16: per-step MXU critical path
        w_attn=w_attn.astype(jnp.bfloat16),     # bf16: softmax is robust
        w_head2=w_head2,                        # f32: final combine accuracy
        const=const,
    )


# ----------------------------------------------------------------------------
# Deterministic parameter init (shapes follow the torch module __init__)
# ----------------------------------------------------------------------------
def init_params(key, feat_sizes, hidden_dim, tagset_size):
    Hd = hidden_dim // 2
    keys = iter(jax.random.split(key, 64))

    def unif(shape, k):
        return jax.random.uniform(next(keys), shape, jnp.float32, -k, k)

    params = {}
    for name, F in feat_sizes.items():
        k = 1.0 / (Hd ** 0.5)
        p = {}
        for d in ('f', 'b'):
            p['wih_' + d] = unif((4 * Hd, F), k)
            p['whh_' + d] = unif((4 * Hd, Hd), k)
            # torch LSTM has bias_ih + bias_hh; they only ever appear summed.
            p['b_' + d] = unif((1, 4 * Hd), k) + unif((1, 4 * Hd), k)
        params[name] = p
        params[name + '_attn_w'] = unif((1, hidden_dim), 1.0 / (hidden_dim ** 0.5))
    k2 = 1.0 / ((3 * hidden_dim) ** 0.5)
    params['hid2tag_w'] = unif((tagset_size, 3 * hidden_dim), k2)
    params['hid2tag_b'] = unif((1, tagset_size), k2)
    return params


# ----------------------------------------------------------------------------
# Pure-JAX reference (for correctness check)
# ----------------------------------------------------------------------------
def _bilstm_ref(x, p):
    T = x.shape[0]
    Hd = p['whh_f'].shape[1]

    def run(wih, whh, b, order):
        h = jnp.zeros((Hd,), jnp.float32)
        c = jnp.zeros((Hd,), jnp.float32)
        outs = [None] * T
        for t in order:
            g = x[t] @ wih.T + h @ whh.T + b[0]
            i = jax.nn.sigmoid(g[0:Hd])
            f = jax.nn.sigmoid(g[Hd:2 * Hd])
            gg = jnp.tanh(g[2 * Hd:3 * Hd])
            o = jax.nn.sigmoid(g[3 * Hd:4 * Hd])
            c = f * c + i * gg
            h = o * jnp.tanh(c)
            outs[t] = h
        return jnp.stack(outs, axis=0)

    of = run(p['wih_f'], p['whh_f'], p['b_f'], list(range(T)))
    ob = run(p['wih_b'], p['whh_b'], p['b_b'], list(range(T - 1, -1, -1)))
    return jnp.concatenate([of, ob], axis=1)


def _attn_ref(lstm_out, w, length):
    T, _ = lstm_out.shape
    logits = (lstm_out @ w[0]).reshape(1, T)
    alphas = jax.nn.softmax(logits, axis=1)
    mask = (jnp.arange(T)[None, :] < length).astype(jnp.float32)
    alphas = alphas * mask
    alphas = alphas / jnp.sum(alphas, axis=1, keepdims=True)
    return alphas @ lstm_out


def model_ref(slow_x, moderate_x, fast_x, params):
    outs = []
    for name, x in (('slow', slow_x), ('moderate', moderate_x), ('fast', fast_x)):
        lo = _bilstm_ref(x, params[name])
        outs.append(_attn_ref(lo, params[name + '_attn_w'], x.shape[0]))
    pad_attn = jnp.concatenate(outs, axis=1)
    tag_space = pad_attn @ params['hid2tag_w'].T + params['hid2tag_b']
    return jax.nn.log_softmax(tag_space, axis=1)


# ----------------------------------------------------------------------------
if __name__ == "__main__":
    # slow = slow+moderate+fast indexes (2+1+1=4), moderate = 1+1=2, fast = 1
    SEQ_LEN = 8
    HIDDEN = 32          # lstm_hidden_dim (per-direction hidden = 16)
    TAGSET = 8
    feat_sizes = {'slow': 4, 'moderate': 2, 'fast': 1}

    key = jax.random.PRNGKey(0)
    kp, ks, km, kf = jax.random.split(key, 4)
    params = init_params(kp, feat_sizes, HIDDEN, TAGSET)

    slow_x = jax.random.normal(ks, (SEQ_LEN, feat_sizes['slow']), jnp.float32)
    moderate_x = jax.random.normal(km, (SEQ_LEN, feat_sizes['moderate']), jnp.float32)
    fast_x = jax.random.normal(kf, (SEQ_LEN, feat_sizes['fast']), jnp.float32)

    packed = pack_params(params, TAGSET, HIDDEN)
    forward = make_model_forward(SEQ_LEN, HIDDEN, TAGSET)

    out = jax.block_until_ready(forward(slow_x, moderate_x, fast_x, packed))

    ref = model_ref(slow_x, moderate_x, fast_x, params)
    assert out.shape == (1, TAGSET)
    assert jnp.allclose(out, ref, atol=1e-2, rtol=1e-2), (out, ref)

    # TODO(synk): pack_padded_sequence / pad_packed_sequence are identity ops here
    # (batch=1, lengths == seq_len) and have no Pallas equivalent; omitted.
    print("KERNEL_OK")
</pallas_src>

<mosaic_0001>
module attributes {stable_mosaic.version = 11 : i64} {
  func.func @kernel(%arg0: memref<8x8xf32, #tpu.memory_space<vmem>>, %arg1: memref<16x512xf32, #tpu.memory_space<vmem>>, %arg2: memref<128x512xbf16, #tpu.memory_space<vmem>>, %arg3: memref<256x3xbf16, #tpu.memory_space<vmem>>, %arg4: memref<256x8xf32, #tpu.memory_space<vmem>>, %arg5: memref<8x512xf32, #tpu.memory_space<vmem>>, %arg6: memref<1x8xf32, #tpu.memory_space<vmem>>) attributes {dimension_semantics = [], scalar_prefetch = 0 : i64, scratch_operands = 0 : i64, tpu.core_type = #tpu.core_type<tc>} {
    %c0 = arith.constant 0 : index
    %c0_0 = arith.constant 0 : index
    %0 = vector.load %arg5[%c0, %c0_0] : memref<8x512xf32, #tpu.memory_space<vmem>>, vector<8x512xf32>
    %1 = vector.extract_strided_slice %0 {offsets = [0, 0], sizes = [1, 512], strides = [1, 1]} : vector<8x512xf32> to vector<1x512xf32>
    %2 = vector.extract_strided_slice %0 {offsets = [1, 0], sizes = [3, 128], strides = [1, 1]} : vector<8x512xf32> to vector<3x128xf32>
    %3 = vector.extract_strided_slice %0 {offsets = [4, 0], sizes = [1, 8], strides = [1, 1]} : vector<8x512xf32> to vector<1x8xf32>
    %c0_1 = arith.constant 0 : index
    %c0_2 = arith.constant 0 : index
    %4 = vector.load %arg0[%c0_1, %c0_2] : memref<8x8xf32, #tpu.memory_space<vmem>>, vector<8x8xf32>
    %c0_3 = arith.constant 0 : index
    %c0_4 = arith.constant 0 : index
    %5 = vector.load %arg1[%c0_3, %c0_4] : memref<16x512xf32, #tpu.memory_space<vmem>>, vector<16x512xf32>
    %6 = vector.extract_strided_slice %5 {offsets = [0, 0], sizes = [8, 512], strides = [1, 1]} : vector<16x512xf32> to vector<8x512xf32>
    %cst = arith.constant dense<0.000000e+00> : vector<8x512xf32>
    %7 = tpu.matmul %4, %6, %cst {dimension_numbers = #tpu.dot_dimension_numbers<[1], [0], [0], [1], [0, 0, 1, 1], [], []>} : vector<8x8xf32>, vector<8x512xf32>, vector<8x512xf32> -> vector<8x512xf32>
    %8 = vector.broadcast %1 : vector<1x512xf32> to vector<8x512xf32>
    %9 = arith.addf %7, %8 : vector<8x512xf32>
    %10 = vector.extract_strided_slice %5 {offsets = [8, 0], sizes = [8, 512], strides = [1, 1]} : vector<16x512xf32> to vector<8x512xf32>
    %cst_5 = arith.constant dense<0.000000e+00> : vector<8x512xf32>
    %11 = tpu.matmul %4, %10, %cst_5 {dimension_numbers = #tpu.dot_dimension_numbers<[1], [0], [0], [1], [0, 0, 1, 1], [], []>} : vector<8x8xf32>, vector<8x512xf32>, vector<8x512xf32> -> vector<8x512xf32>
    %c0_6 = arith.constant 0 : index
    %c0_7 = arith.constant 0 : index
    %12 = vector.load %arg2[%c0_6, %c0_7] : memref<128x512xbf16, #tpu.memory_space<vmem>>, vector<128x512xbf16>
    %cst_8 = arith.constant 0.000000e+00 : f32
    %13 = vector.broadcast %cst_8 : f32 to vector<1x128xf32>
    %cst_9 = arith.constant 0.000000e+00 : f32
    %14 = vector.broadcast %cst_9 : f32 to vector<1x128xf32>
    %15 = vector.extract_strided_slice %9 {offsets = [0, 0], sizes = [1, 512], strides = [1, 1]} : vector<8x512xf32> to vector<1x512xf32>
    %16 = vector.extract_strided_slice %11 {offsets = [7, 0], sizes = [1, 512], strides = [1, 1]} : vector<8x512xf32> to vector<1x512xf32>
    %17 = arith.addf %15, %16 : vector<1x512xf32>
    %18 = arith.truncf %13 : vector<1x128xf32> to vector<1x128xbf16>
    %cst_10 = arith.constant dense<0.000000e+00> : vector<1x512xf32>
    %19 = tpu.matmul %18, %12, %cst_10 {dimension_numbers = #tpu.dot_dimension_numbers<[1], [0], [0], [1], [0, 0, 1, 1], [], []>} : vector<1x128xbf16>, vector<128x512xbf16>, vector<1x512xf32> -> vector<1x512xf32>
    %20 = arith.addf %17, %19 : vector<1x512xf32>
    %21 = vector.extract_strided_slice %20 {offsets = [0, 0], sizes = [1, 384], strides = [1, 1]} : vector<1x512xf32> to vector<1x384xf32>
    %22 = arith.negf %21 : vector<1x384xf32>
    %23 = math.exp %22 : vector<1x384xf32>
    %cst_11 = arith.constant 1.000000e+00 : f32
    %24 = vector.broadcast %cst_11 : f32 to vector<1x384xf32>
    %25 = arith.addf %24, %23 : vector<1x384xf32>
    %26 = arith.divf %24, %25 : vector<1x384xf32>
    %27 = vector.extract_strided_slice %26 {offsets = [0, 0], sizes = [1, 128], strides = [1, 1]} : vector<1x384xf32> to vector<1x128xf32>
    %28 = vector.extract_strided_slice %26 {offsets = [0, 128], sizes = [1, 128], strides = [1, 1]} : vector<1x384xf32> to vector<1x128xf32>
    %29 = vector.extract_strided_slice %26 {offsets = [0, 256], sizes = [1, 128], strides = [1, 1]} : vector<1x384xf32> to vector<1x128xf32>
    %30 = vector.extract_strided_slice %20 {offsets = [0, 384], sizes = [1, 128], strides = [1, 1]} : vector<1x512xf32> to vector<1x128xf32>
    %31 = math.tanh %30 : vector<1x128xf32>
    %32 = arith.mulf %28, %14 : vector<1x128xf32>
    %33 = arith.mulf %27, %31 : vector<1x128xf32>
    %34 = arith.addf %32, %33 : vector<1x128xf32>
    %35 = math.tanh %34 : vector<1x128xf32>
    %36 = arith.mulf %29, %35 : vector<1x128xf32>
    %37 = vector.extract_strided_slice %9 {offsets = [1, 0], sizes = [1, 512], strides = [1, 1]} : vector<8x512xf32> to vector<1x512xf32>
    %38 = vector.extract_strided_slice %11 {offsets = [6, 0], sizes = [1, 512], strides = [1, 1]} : vector<8x512xf32> to vector<1x512xf32>
    %39 = arith.addf %37, %38 : vector<1x512xf32>
    %40 = arith.truncf %36 : vector<1x128xf32> to vector<1x128xbf16>
    %cst_12 = arith.constant dense<0.000000e+00> : vector<1x512xf32>
    %41 = tpu.matmul %40, %12, %cst_12 {dimension_numbers = #tpu.dot_dimension_numbers<[1], [0], [0], [1], [0, 0, 1, 1], [], []>} : vector<1x128xbf16>, vector<128x512xbf16>, vector<1x512xf32> -> vector<1x512xf32>
    %42 = arith.addf %39, %41 : vector<1x512xf32>
    %43 = vector.extract_strided_slice %42 {offsets = [0, 0], sizes = [1, 384], strides = [1, 1]} : vector<1x512xf32> to vector<1x384xf32>
    %44 = arith.negf %43 : vector<1x384xf32>
    %45 = math.exp %44 : vector<1x384xf32>
    %cst_13 = arith.constant 1.000000e+00 : f32
    %46 = vector.broadcast %cst_13 : f32 to vector<1x384xf32>
    %47 = arith.addf %46, %45 : vector<1x384xf32>
    %48 = arith.divf %46, %47 : vector<1x384xf32>
    %49 = vector.extract_strided_slice %48 {offsets = [0, 0], sizes = [1, 128], strides = [1, 1]} : vector<1x384xf32> to vector<1x128xf32>
    %50 = vector.extract_strided_slice %48 {offsets = [0, 128], sizes = [1, 128], strides = [1, 1]} : vector<1x384xf32> to vector<1x128xf32>
    %51 = vector.extract_strided_slice %48 {offsets = [0, 256], sizes = [1, 128], strides = [1, 1]} : vector<1x384xf32> to vector<1x128xf32>
    %52 = vector.extract_strided_slice %42 {offsets = [0, 384], sizes = [1, 128], strides = [1, 1]} : vector<1x512xf32> to vector<1x128xf32>
    %53 = math.tanh %52 : vector<1x128xf32>
    %54 = arith.mulf %50, %34 : vector<1x128xf32>
    %55 = arith.mulf %49, %53 : vector<1x128xf32>
    %56 = arith.addf %54, %55 : vector<1x128xf32>
    %57 = math.tanh %56 : vector<1x128xf32>
    %58 = arith.mulf %51, %57 : vector<1x128xf32>
    %59 = vector.extract_strided_slice %9 {offsets = [2, 0], sizes = [1, 512], strides = [1, 1]} : vector<8x512xf32> to vector<1x512xf32>
    %60 = vector.extract_strided_slice %11 {offsets = [5, 0], sizes = [1, 512], strides = [1, 1]} : vector<8x512xf32> to vector<1x512xf32>
    %61 = arith.addf %59, %60 : vector<1x512xf32>
    %62 = arith.truncf %58 : vector<1x128xf32> to vector<1x128xbf16>
    %cst_14 = arith.constant dense<0.000000e+00> : vector<1x512xf32>
    %63 = tpu.matmul %62, %12, %cst_14 {dimension_numbers = #tpu.dot_dimension_numbers<[1], [0], [0], [1], [0, 0, 1, 1], [], []>} : vector<1x128xbf16>, vector<128x512xbf16>, vector<1x512xf32> -> vector<1x512xf32>
    %64 = arith.addf %61, %63 : vector<1x512xf32>
    %65 = vector.extract_strided_slice %64 {offsets = [0, 0], sizes = [1, 384], strides = [1, 1]} : vector<1x512xf32> to vector<1x384xf32>
    %66 = arith.negf %65 : vector<1x384xf32>
    %67 = math.exp %66 : vector<1x384xf32>
    %cst_15 = arith.constant 1.000000e+00 : f32
    %68 = vector.broadcast %cst_15 : f32 to vector<1x384xf32>
    %69 = arith.addf %68, %67 : vector<1x384xf32>
    %70 = arith.divf %68, %69 : vector<1x384xf32>
    %71 = vector.extract_strided_slice %70 {offsets = [0, 0], sizes = [1, 128], strides = [1, 1]} : vector<1x384xf32> to vector<1x128xf32>
    %72 = vector.extract_strided_slice %70 {offsets = [0, 128], sizes = [1, 128], strides = [1, 1]} : vector<1x384xf32> to vector<1x128xf32>
    %73 = vector.extract_strided_slice %70 {offsets = [0, 256], sizes = [1, 128], strides = [1, 1]} : vector<1x384xf32> to vector<1x128xf32>
    %74 = vector.extract_strided_slice %64 {offsets = [0, 384], sizes = [1, 128], strides = [1, 1]} : vector<1x512xf32> to vector<1x128xf32>
    %75 = math.tanh %74 : vector<1x128xf32>
    %76 = arith.mulf %72, %56 : vector<1x128xf32>
    %77 = arith.mulf %71, %75 : vector<1x128xf32>
    %78 = arith.addf %76, %77 : vector<1x128xf32>
    %79 = math.tanh %78 : vector<1x128xf32>
    %80 = arith.mulf %73, %79 : vector<1x128xf32>
    %81 = vector.extract_strided_slice %9 {offsets = [3, 0], sizes = [1, 512], strides = [1, 1]} : vector<8x512xf32> to vector<1x512xf32>
    %82 = vector.extract_strided_slice %11 {offsets = [4, 0], sizes = [1, 512], strides = [1, 1]} : vector<8x512xf32> to vector<1x512xf32>
    %83 = arith.addf %81, %82 : vector<1x512xf32>
    %84 = arith.truncf %80 : vector<1x128xf32> to vector<1x128xbf16>
    %cst_16 = arith.constant dense<0.000000e+00> : vector<1x512xf32>
    %85 = tpu.matmul %84, %12, %cst_16 {dimension_numbers = #tpu.dot_dimension_numbers<[1], [0], [0], [1], [0, 0, 1, 1], [], []>} : vector<1x128xbf16>, vector<128x512xbf16>, vector<1x512xf32> -> vector<1x512xf32>
    %86 = arith.addf %83, %85 : vector<1x512xf32>
    %87 = vector.extract_strided_slice %86 {offsets = [0, 0], sizes = [1, 384], strides = [1, 1]} : vector<1x512xf32> to vector<1x384xf32>
    %88 = arith.negf %87 : vector<1x384xf32>
    %89 = math.exp %88 : vector<1x384xf32>
    %cst_17 = arith.constant 1.000000e+00 : f32
    %90 = vector.broadcast %cst_17 : f32 to vector<1x384xf32>
    %91 = arith.addf %90, %89 : vector<1x384xf32>
    %92 = arith.divf %90, %91 : vector<1x384xf32>
    %93 = vector.extract_strided_slice %92 {offsets = [0, 0], sizes = [1, 128], strides = [1, 1]} : vector<1x384xf32> to vector<1x128xf32>
    %94 = vector.extract_strided_slice %92 {offsets = [0, 128], sizes = [1, 128], strides = [1, 1]} : vector<1x384xf32> to vector<1x128xf32>
    %95 = vector.extract_strided_slice %92 {offsets = [0, 256], sizes = [1, 128], strides = [1, 1]} : vector<1x384xf32> to vector<1x128xf32>
    %96 = vector.extract_strided_slice %86 {offsets = [0, 384], sizes = [1, 128], strides = [1, 1]} : vector<1x512xf32> to vector<1x128xf32>
    %97 = math.tanh %96 : vector<1x128xf32>
    %98 = arith.mulf %94, %78 : vector<1x128xf32>
    %99 = arith.mulf %93, %97 : vector<1x128xf32>
    %100 = arith.addf %98, %99 : vector<1x128xf32>
    %101 = math.tanh %100 : vector<1x128xf32>
    %102 = arith.mulf %95, %101 : vector<1x128xf32>
    %103 = vector.extract_strided_slice %9 {offsets = [4, 0], sizes = [1, 512], strides = [1, 1]} : vector<8x512xf32> to vector<1x512xf32>
    %104 = vector.extract_strided_slice %11 {offsets = [3, 0], sizes = [1, 512], strides = [1, 1]} : vector<8x512xf32> to vector<1x512xf32>
    %105 = arith.addf %103, %104 : vector<1x512xf32>
    %106 = arith.truncf %102 : vector<1x128xf32> to vector<1x128xbf16>
    %cst_18 = arith.constant dense<0.000000e+00> : vector<1x512xf32>
    %107 = tpu.matmul %106, %12, %cst_18 {dimension_numbers = #tpu.dot_dimension_numbers<[1], [0], [0], [1], [0, 0, 1, 1], [], []>} : vector<1x128xbf16>, vector<128x512xbf16>, vector<1x512xf32> -> vector<1x512xf32>
    %108 = arith.addf %105, %107 : vector<1x512xf32>
    %109 = vector.extract_strided_slice %108 {offsets = [0, 0], sizes = [1, 384], strides = [1, 1]} : vector<1x512xf32> to vector<1x384xf32>
    %110 = arith.negf %109 : vector<1x384xf32>
    %111 = math.exp %110 : vector<1x384xf32>
    %cst_19 = arith.constant 1.000000e+00 : f32
    %112 = vector.broadcast %cst_19 : f32 to vector<1x384xf32>
    %113 = arith.addf %112, %111 : vector<1x384xf32>
    %114 = arith.divf %112, %113 : vector<1x384xf32>
    %115 = vector.extract_strided_slice %114 {offsets = [0, 0], sizes = [1, 128], strides = [1, 1]} : vector<1x384xf32> to vector<1x128xf32>
    %116 = vector.extract_strided_slice %114 {offsets = [0, 128], sizes = [1, 128], strides = [1, 1]} : vector<1x384xf32> to vector<1x128xf32>
    %117 = vector.extract_strided_slice %114 {offsets = [0, 256], sizes = [1, 128], strides = [1, 1]} : vector<1x384xf32> to vector<1x128xf32>
    %118 = vector.extract_strided_slice %108 {offsets = [0, 384], sizes = [1, 128], strides = [1, 1]} : vector<1x512xf32> to vector<1x128xf32>
    %119 = math.tanh %118 : vector<1x128xf32>
    %120 = arith.mulf %116, %100 : vector<1x128xf32>
    %121 = arith.mulf %115, %119 : vector<1x128xf32>
    %122 = arith.addf %120, %121 : vector<1x128xf32>
    %123 = math.tanh %122 : vector<1x128xf32>
    %124 = arith.mulf %117, %123 : vector<1x128xf32>
    %125 = vector.extract_strided_slice %9 {offsets = [5, 0], sizes = [1, 512], strides = [1, 1]} : vector<8x512xf32> to vector<1x512xf32>
    %126 = vector.extract_strided_slice %11 {offsets = [2, 0], sizes = [1, 512], strides = [1, 1]} : vector<8x512xf32> to vector<1x512xf32>
    %127 = arith.addf %125, %126 : vector<1x512xf32>
    %128 = arith.truncf %124 : vector<1x128xf32> to vector<1x128xbf16>
    %cst_20 = arith.constant dense<0.000000e+00> : vector<1x512xf32>
    %129 = tpu.matmul %128, %12, %cst_20 {dimension_numbers = #tpu.dot_dimension_numbers<[1], [0], [0], [1], [0, 0, 1, 1], [], []>} : vector<1x128xbf16>, vector<128x512xbf16>, vector<1x512xf32> -> vector<1x512xf32>
    %130 = arith.addf %127, %129 : vector<1x512xf32>
    %131 = vector.extract_strided_slice %130 {offsets = [0, 0], sizes = [1, 384], strides = [1, 1]} : vector<1x512xf32> to vector<1x384xf32>
    %132 = arith.negf %131 : vector<1x384xf32>
    %133 = math.exp %132 : vector<1x384xf32>
    %cst_21 = arith.constant 1.000000e+00 : f32
    %134 = vector.broadcast %cst_21 : f32 to vector<1x384xf32>
    %135 = arith.addf %134, %133 : vector<1x384xf32>
    %136 = arith.divf %134, %135 : vector<1x384xf32>
    %137 = vector.extract_strided_slice %136 {offsets = [0, 0], sizes = [1, 128], strides = [1, 1]} : vector<1x384xf32> to vector<1x128xf32>
    %138 = vector.extract_strided_slice %136 {offsets = [0, 128], sizes = [1, 128], strides = [1, 1]} : vector<1x384xf32> to vector<1x128xf32>
    %139 = vector.extract_strided_slice %136 {offsets = [0, 256], sizes = [1, 128], strides = [1, 1]} : vector<1x384xf32> to vector<1x128xf32>
    %140 = vector.extract_strided_slice %130 {offsets = [0, 384], sizes = [1, 128], strides = [1, 1]} : vector<1x512xf32> to vector<1x128xf32>
    %141 = math.tanh %140 : vector<1x128xf32>
    %142 = arith.mulf %138, %122 : vector<1x128xf32>
    %143 = arith.mulf %137, %141 : vector<1x128xf32>
    %144 = arith.addf %142, %143 : vector<1x128xf32>
    %145 = math.tanh %144 : vector<1x128xf32>
    %146 = arith.mulf %139, %145 : vector<1x128xf32>
    %147 = vector.extract_strided_slice %9 {offsets = [6, 0], sizes = [1, 512], strides = [1, 1]} : vector<8x512xf32> to vector<1x512xf32>
    %148 = vector.extract_strided_slice %11 {offsets = [1, 0], sizes = [1, 512], strides = [1, 1]} : vector<8x512xf32> to vector<1x512xf32>
    %149 = arith.addf %147, %148 : vector<1x512xf32>
    %150 = arith.truncf %146 : vector<1x128xf32> to vector<1x128xbf16>
    %cst_22 = arith.constant dense<0.000000e+00> : vector<1x512xf32>
    %151 = tpu.matmul %150, %12, %cst_22 {dimension_numbers = #tpu.dot_dimension_numbers<[1], [0], [0], [1], [0, 0, 1, 1], [], []>} : vector<1x128xbf16>, vector<128x512xbf16>, vector<1x512xf32> -> vector<1x512xf32>
    %152 = arith.addf %149, %151 : vector<1x512xf32>
    %153 = vector.extract_strided_slice %152 {offsets = [0, 0], sizes = [1, 384], strides = [1, 1]} : vector<1x512xf32> to vector<1x384xf32>
    %154 = arith.negf %153 : vector<1x384xf32>
    %155 = math.exp %154 : vector<1x384xf32>
    %cst_23 = arith.constant 1.000000e+00 : f32
    %156 = vector.broadcast %cst_23 : f32 to vector<1x384xf32>
    %157 = arith.addf %156, %155 : vector<1x384xf32>
    %158 = arith.divf %156, %157 : vector<1x384xf32>
    %159 = vector.extract_strided_slice %158 {offsets = [0, 0], sizes = [1, 128], strides = [1, 1]} : vector<1x384xf32> to vector<1x128xf32>
    %160 = vector.extract_strided_slice %158 {offsets = [0, 128], sizes = [1, 128], strides = [1, 1]} : vector<1x384xf32> to vector<1x128xf32>
    %161 = vector.extract_strided_slice %158 {offsets = [0, 256], sizes = [1, 128], strides = [1, 1]} : vector<1x384xf32> to vector<1x128xf32>
    %162 = vector.extract_strided_slice %152 {offsets = [0, 384], sizes = [1, 128], strides = [1, 1]} : vector<1x512xf32> to vector<1x128xf32>
    %163 = math.tanh %162 : vector<1x128xf32>
    %164 = arith.mulf %160, %144 : vector<1x128xf32>
    %165 = arith.mulf %159, %163 : vector<1x128xf32>
    %166 = arith.addf %164, %165 : vector<1x128xf32>
    %167 = math.tanh %166 : vector<1x128xf32>
    %168 = arith.mulf %161, %167 : vector<1x128xf32>
    %169 = vector.extract_strided_slice %9 {offsets = [7, 0], sizes = [1, 512], strides = [1, 1]} : vector<8x512xf32> to vector<1x512xf32>
    %170 = vector.extract_strided_slice %11 {offsets = [0, 0], sizes = [1, 512], strides = [1, 1]} : vector<8x512xf32> to vector<1x512xf32>
    %171 = arith.addf %169, %170 : vector<1x512xf32>
    %172 = arith.truncf %168 : vector<1x128xf32> to vector<1x128xbf16>
    %cst_24 = arith.constant dense<0.000000e+00> : vector<1x512xf32>
    %173 = tpu.matmul %172, %12, %cst_24 {dimension_numbers = #tpu.dot_dimension_numbers<[1], [0], [0], [1], [0, 0, 1, 1], [], []>} : vector<1x128xbf16>, vector<128x512xbf16>, vector<1x512xf32> -> vector<1x512xf32>
    %174 = arith.addf %171, %173 : vector<1x512xf32>
    %175 = vector.extract_strided_slice %174 {offsets = [0, 0], sizes = [1, 384], strides = [1, 1]} : vector<1x512xf32> to vector<1x384xf32>
    %176 = arith.negf %175 : vector<1x384xf32>
    %177 = math.exp %176 : vector<1x384xf32>
    %cst_25 = arith.constant 1.000000e+00 : f32
    %178 = vector.broadcast %cst_25 : f32 to vector<1x384xf32>
    %179 = arith.addf %178, %177 : vector<1x384xf32>
    %180 = arith.divf %178, %179 : vector<1x384xf32>
    %181 = vector.extract_strided_slice %180 {offsets = [0, 0], sizes = [1, 128], strides = [1, 1]} : vector<1x384xf32> to vector<1x128xf32>
    %182 = vector.extract_strided_slice %180 {offsets = [0, 128], sizes = [1, 128], strides = [1, 1]} : vector<1x384xf32> to vector<1x128xf32>
    %183 = vector.extract_strided_slice %180 {offsets = [0, 256], sizes = [1, 128], strides = [1, 1]} : vector<1x384xf32> to vector<1x128xf32>
    %184 = vector.extract_strided_slice %174 {offsets = [0, 384], sizes = [1, 128], strides = [1, 1]} : vector<1x512xf32> to vector<1x128xf32>
    %185 = math.tanh %184 : vector<1x128xf32>
    %186 = arith.mulf %182, %166 : vector<1x128xf32>
    %187 = arith.mulf %181, %185 : vector<1x128xf32>
    %188 = arith.addf %186, %187 : vector<1x128xf32>
    %189 = math.tanh %188 : vector<1x128xf32>
    %190 = arith.mulf %183, %189 : vector<1x128xf32>
    %191 = tpu.concatenate %36, %58, %80, %102, %124, %146, %168, %190 in 0 : vector<1x128xf32>, vector<1x128xf32>, vector<1x128xf32>, vector<1x128xf32>, vector<1x128xf32>, vector<1x128xf32>, vector<1x128xf32>, vector<1x128xf32> -> vector<8x128xf32>
    %192 = tpu.concatenate %190, %168, %146, %124, %102, %80, %58, %36 in 0 : vector<1x128xf32>, vector<1x128xf32>, vector<1x128xf32>, vector<1x128xf32>, vector<1x128xf32>, vector<1x128xf32>, vector<1x128xf32>, vector<1x128xf32> -> vector<8x128xf32>
    %193 = tpu.concatenate %191, %192 in 1 : vector<8x128xf32>, vector<8x128xf32> -> vector<8x256xf32>
    %194 = arith.truncf %193 : vector<8x256xf32> to vector<8x256xbf16>
    %c0_26 = arith.constant 0 : index
    %c0_27 = arith.constant 0 : index
    %195 = vector.load %arg3[%c0_26, %c0_27] : memref<256x3xbf16, #tpu.memory_space<vmem>>, vector<256x3xbf16>
    %cst_28 = arith.constant dense<0.000000e+00> : vector<8x3xf32>
    %196 = tpu.matmul %194, %195, %cst_28 {dimension_numbers = #tpu.dot_dimension_numbers<[1], [0], [0], [1], [0, 0, 1, 1], [], []>} : vector<8x256xbf16>, vector<256x3xbf16>, vector<8x3xf32> -> vector<8x3xf32>
    %cst_29 = arith.constant dense<0xFF800000> : vector<3xf32>
    %197 = vector.multi_reduction <maximumf>, %196, %cst_29 [0] : vector<8x3xf32> to vector<3xf32>
    %198 = vector.shape_cast %197 : vector<3xf32> to vector<1x3xf32>
    %199 = vector.broadcast %198 : vector<1x3xf32> to vector<8x3xf32>
    %200 = arith.subf %196, %199 : vector<8x3xf32>
    %201 = math.exp %200 : vector<8x3xf32>
    %cst_30 = arith.constant dense<0.000000e+00> : vector<3xf32>
    %202 = vector.multi_reduction <add>, %201, %cst_30 [0] : vector<8x3xf32> to vector<3xf32>
    %203 = vector.shape_cast %202 : vector<3xf32> to vector<1x3xf32>
    %204 = vector.broadcast %203 : vector<1x3xf32> to vector<8x3xf32>
    %205 = arith.divf %201, %204 : vector<8x3xf32>
    %cst_31 = arith.constant dense<0.000000e+00> : vector<8x128xf32>
    %206 = tpu.matmul %205, %2, %cst_31 {dimension_numbers = #tpu.dot_dimension_numbers<[1], [0], [0], [1], [0, 0, 1, 1], [], []>} : vector<8x3xf32>, vector<3x128xf32>, vector<8x128xf32> -> vector<8x128xf32>
    %207 = arith.mulf %206, %191 : vector<8x128xf32>
    %cst_32 = arith.constant dense<0.000000e+00> : vector<128xf32>
    %208 = vector.multi_reduction <add>, %207, %cst_32 [0] : vector<8x128xf32> to vector<128xf32>
    %209 = vector.shape_cast %208 : vector<128xf32> to vector<1x128xf32>
    %210 = arith.mulf %206, %192 : vector<8x128xf32>
    %cst_33 = arith.constant dense<0.000000e+00> : vector<128xf32>
    %211 = vector.multi_reduction <add>, %210, %cst_33 [0] : vector<8x128xf32> to vector<128xf32>
    %212 = vector.shape_cast %211 : vector<128xf32> to vector<1x128xf32>
    %213 = tpu.concatenate %209, %212 in 1 : vector<1x128xf32>, vector<1x128xf32> -> vector<1x256xf32>
    %c0_34 = arith.constant 0 : index
    %c0_35 = arith.constant 0 : index
    %214 = vector.load %arg4[%c0_34, %c0_35] : memref<256x8xf32, #tpu.memory_space<vmem>>, vector<256x8xf32>
    %cst_36 = arith.constant dense<0.000000e+00> : vector<1x8xf32>
    %215 = tpu.matmul %213, %214, %cst_36 {dimension_numbers = #tpu.dot_dimension_numbers<[1], [0], [0], [1], [0, 0, 1, 1], [], []>} : vector<1x256xf32>, vector<256x8xf32>, vector<1x8xf32> -> vector<1x8xf32>
    %216 = arith.addf %215, %3 : vector<1x8xf32>
    %cst_37 = arith.constant dense<0xFF800000> : vector<1xf32>
    %217 = vector.multi_reduction <maximumf>, %216, %cst_37 [1] : vector<1x8xf32> to vector<1xf32>
    %218 = vector.shape_cast %217 : vector<1xf32> to vector<1x1xf32>
    %219 = vector.broadcast %218 : vector<1x1xf32> to vector<1x8xf32>
    %220 = arith.subf %216, %219 : vector<1x8xf32>
    %221 = math.exp %220 : vector<1x8xf32>
    %cst_38 = arith.constant dense<0.000000e+00> : vector<1xf32>
    %222 = vector.multi_reduction <add>, %221, %cst_38 [1] : vector<1x8xf32> to vector<1xf32>
    %223 = vector.shape_cast %222 : vector<1xf32> to vector<1x1xf32>
    %224 = math.log %223 : vector<1x1xf32>
    %225 = vector.broadcast %224 : vector<1x1xf32> to vector<1x8xf32>
    %226 = arith.subf %220, %225 : vector<1x8xf32>
    %c0_39 = arith.constant 0 : index
    %c0_40 = arith.constant 0 : index
    %227 = vector.load %arg6[%c0_39, %c0_40] : memref<1x8xf32, #tpu.memory_space<vmem>>, vector<1x8xf32>
    tpu.vector_store %arg6[%c0_39, %c0_40], %226 {strides = array<i32>} : memref<1x8xf32, #tpu.memory_space<vmem>>, vector<1x8xf32>,
    return
  }
}

</mosaic_0001>

<bundles_post_ra>
// kernel: forward.1
= control target key start
LH: loop header
LB: loop body
LE: loop exit
PB: predicated region body
PF: predicated region fallthrough
CT: control target
= control target key end

     0   :  { %vm54_vm0 = vcmask 64512   ;;  %v3526_v6 = vmov 0.0   ;;  %v3528_v20 = vmov 0   ;;  %s3519_s0 = inlined_call_operand.vmem [shape: f32[8,8], index: 0, kind: input, shape index: {}]   ;;  %s3520_s1 = inlined_call_operand.vmem [shape: f32[16,512], index: 1, kind: input, shape index: {}]   ;;  %s3521_s2 = inlined_call_operand.vmem [shape: bf16[128,512], index: 2, kind: input, shape index: {}]   ;;  %s3522_s3 = inlined_call_operand.vmem [shape: bf16[256,3], index: 3, kind: input, shape index: {}]   ;;  %s3523_s4 = inlined_call_operand.vmem [shape: f32[256,8], index: 4, kind: input, shape index: {}]   ;;  %s3524_s5 = inlined_call_operand.vmem [shape: f32[8,512], index: 5, kind: input, shape index: {}]   ;;  %s3525_s6 = inlined_call_operand.hbm [shape: f32[1,8], index: 6, kind: output, shape index: {}]  }
   0x1   :  { %v31_v0 = vld [vmem:[%s3520_s1 + $0x8] sm:$0xff]  ;;  %v33_v1 = vld [vmem:[%s3520_s1 + $0x18] sm:$0xff]  ;;  %v30_v2 = vld [vmem:[%s3520_s1] sm:$0xff]  ;;  %122 = vmatprep.mubr.f32.mxu0 %v3526_v6  ;;  %193 = vmatprep.mubr.f32.mxu1 %v3526_v6 }
   0x2   :  { %58 = vmatprep.subr.mxu0 %v31_v0  ;;  %129 = vmatprep.subr.mxu1 %v33_v1  ;;  %v32_v3 = vld [vmem:[%s3520_s1 + $0x10] sm:$0xff]  ;;  %v29_v4 = vld [vmem:[%s3519_s0] sm:$0xff]  ;;  %v35_v5 = vld [vmem:[%s3520_s1 + $0x28] sm:$0xff] }
   0x3   :  { %59 = vmatpush1.msra.mxu0 %v30_v2  ;;  %v34_v7 = vld [vmem:[%s3520_s1 + $0x20] sm:$0xff]  ;;  %v37_v8 = vld [vmem:[%s3520_s1 + $0x38] sm:$0xff]  ;;  %v36_v9 = vld [vmem:[%s3520_s1 + $0x30] sm:$0xff]  ;;  %130 = vmatpush1.msra.mxu1 %v32_v3 }
   0x4   :  { %v2565_v10 = vld [vmem:[%s3521_s2 + $0x4] ss:$16 sps:$4 sm:$0xff]   ;;  %2059 = vmatmul.mubr.msk.f32.vlgmr.msra.gmra.mrb[0].mxu0 %vm54_vm0, %v29_v4  ;;  %2060 = vmatmul.mubr.msk.f32.vlgmr.msra.gmra.mrb[0].mxu1 %vm54_vm0, %v29_v4  ;;  %v2572_v11 = vld [vmem:[%s3521_s2 + $0xc] ss:$16 sps:$4 sm:$0xff]   ;;  %v2577_v12 = vld [vmem:[%s3521_s2] ss:$16 sps:$4 sm:$0xff]  }
   0x5   :  { %200 = vmatprep.subr.mxu0 %v35_v5  ;;  %271 = vmatprep.subr.mxu1 %v37_v8  ;;  %v2582_v13 = vld [vmem:[%s3521_s2 + $0x8] ss:$16 sps:$4 sm:$0xff]   ;;  %v2589_v14 = vld [vmem:[%s3521_s2 + $0x24] ss:$16 sps:$4 sm:$0xff]   ;;  %v2594_v15 = vld [vmem:[%s3521_s2 + $0x2c] ss:$16 sps:$4 sm:$0xff]  }
   0x6   :  { %201 = vmatpush1.msra.mxu0 %v34_v7  ;;  %272 = vmatpush1.msra.mxu1 %v36_v9  ;;  %v2605_v16 = vld [vmem:[%s3521_s2 + $0x20] ss:$16 sps:$4 sm:$0xff]   ;;  %v2610_v17 = vld [vmem:[%s3521_s2 + $0x28] ss:$16 sps:$4 sm:$0xff]   ;;  %v2615_v18 = vld [vmem:[%s3521_s2 + $0x44] ss:$16 sps:$4 sm:$0xff]  }
   0x7   :  { %264 = vmatprep.mubr.f32.mxu0 %v3526_v6  ;;  %335 = vmatprep.mubr.f32.mxu1 %v3526_v6  ;;  %v2622_v19 = vld [vmem:[%s3521_s2 + $0x4c] ss:$16 sps:$4 sm:$0xff]   ;;  %v2629_v21 = vld [vmem:[%s3521_s2 + $0x40] ss:$16 sps:$4 sm:$0xff]   ;;  %v2636_v22 = vld [vmem:[%s3521_s2 + $0x48] ss:$16 sps:$4 sm:$0xff]  }
   0x8   :  { %550 = vmatprep.subr.bf16.mxu0 %v2565_v10  ;;  %591 = vmatprep.subr.bf16.mxu1 %v2572_v11  ;;  %v2643_v23 = vld [vmem:[%s3521_s2 + $0x64] ss:$16 sps:$4 sm:$0xff]   ;;  %v2648_v24 = vld [vmem:[%s3521_s2 + $0x6c] ss:$16 sps:$4 sm:$0xff]   ;;  %v2655_v25 = vld [vmem:[%s3521_s2 + $0x60] ss:$16 sps:$4 sm:$0xff]  }
   0x9   :  { %2061 = vmatmul.mubr.msk.f32.vlgmr.msra.gmra.mrb[2].mxu0 %vm54_vm0, %v29_v4  ;;  %2062 = vmatmul.mubr.msk.f32.vlgmr.msra.gmra.mrb[2].mxu1 %vm54_vm0, %v29_v4  ;;  %v2660_v26 = vld [vmem:[%s3521_s2 + $0x68] ss:$16 sps:$4 sm:$0xff]   ;;  %v2665_v27 = vld [vmem:[%s3521_s2 + $0x84] ss:$16 sps:$4 sm:$0xff]   ;;  %v2672_v28 = vld [vmem:[%s3521_s2 + $0x8c] ss:$16 sps:$4 sm:$0xff]  }
   0xa   :  { %551 = vmatpush1.bf16.msra.mxu0 %v2577_v12  ;;  %592 = vmatpush1.bf16.msra.mxu1 %v2582_v13  ;;  %v2677_v29 = vld [vmem:[%s3521_s2 + $0x80] ss:$16 sps:$4 sm:$0xff]   ;;  %v2684_v30 = vld [vmem:[%s3521_s2 + $0x88] ss:$16 sps:$4 sm:$0xff]   ;;  %v2691_v31 = vld [vmem:[%s3521_s2 + $0xa4] ss:$16 sps:$4 sm:$0xff]  }
   0xb   :  { %552 = vmatprep.subr.bf16.mxu0 %v2589_v14  ;;  %593 = vmatprep.subr.bf16.mxu1 %v2594_v15  ;;  %v2696_v32 = vld [vmem:[%s3521_s2 + $0xac] ss:$16 sps:$4 sm:$0xff]   ;;  %v2701_v33 = vld [vmem:[%s3521_s2 + $0xa0] ss:$16 sps:$4 sm:$0xff]   ;;  %v2706_v34 = vld [vmem:[%s3521_s2 + $0xa8] ss:$16 sps:$4 sm:$0xff]  }
   0xc   :  { %582 = vmatprep.mubr.bf16.mxu0 %v3528_v20  ;;  %623 = vmatprep.mubr.bf16.mxu1 %v3528_v20  ;;  %v2711_v35 = vld [vmem:[%s3521_s2 + $0xc4] ss:$16 sps:$4 sm:$0xff]   ;;  %v2716_v36 = vld [vmem:[%s3521_s2 + $0xcc] ss:$16 sps:$4 sm:$0xff]   ;;  %v2725_v37 = vld [vmem:[%s3521_s2 + $0xc0] ss:$16 sps:$4 sm:$0xff]  }
   0xd   :  { %v2730_v38 = vld [vmem:[%s3521_s2 + $0xc8] ss:$16 sps:$4 sm:$0xff]   ;;  %v2735_v39 = vld [vmem:[%s3521_s2 + $0xe4] ss:$16 sps:$4 sm:$0xff]   ;;  %v2740_v40 = vld [vmem:[%s3521_s2 + $0xec] ss:$16 sps:$4 sm:$0xff]  }
   0xe   :  { %553 = vmatpush1.bf16.msra.mxu0 %v2605_v16  ;;  %594 = vmatpush1.bf16.msra.mxu1 %v2610_v17  ;;  %v2749_v41 = vld [vmem:[%s3521_s2 + $0xe0] ss:$16 sps:$4 sm:$0xff]   ;;  %v2754_v42 = vld [vmem:[%s3521_s2 + $0xe8] ss:$16 sps:$4 sm:$0xff]  }
   0xf   :  { %554 = vmatprep.subr.bf16.mxu0 %v2615_v18  ;;  %595 = vmatprep.subr.bf16.mxu1 %v2622_v19 }
  0x12   :  { %555 = vmatpush1.bf16.msra.mxu0 %v2629_v21  ;;  %596 = vmatpush1.bf16.msra.mxu1 %v2636_v22 }
  0x13   :  { %556 = vmatprep.subr.bf16.mxu0 %v2643_v23  ;;  %597 = vmatprep.subr.bf16.mxu1 %v2648_v24 }
  0x16   :  { %557 = vmatpush1.bf16.msra.mxu0 %v2655_v25  ;;  %598 = vmatpush1.bf16.msra.mxu1 %v2660_v26 }
  0x17   :  { %558 = vmatprep.subr.bf16.mxu0 %v2665_v27  ;;  %599 = vmatprep.subr.bf16.mxu1 %v2672_v28 }
  0x1a   :  { %559 = vmatpush1.bf16.msra.mxu0 %v2677_v29  ;;  %600 = vmatpush1.bf16.msra.mxu1 %v2684_v30 }
  0x1b   :  { %560 = vmatprep.subr.bf16.mxu0 %v2691_v31  ;;  %601 = vmatprep.subr.bf16.mxu1 %v2696_v32 }
  0x1e   :  { %561 = vmatpush1.bf16.msra.mxu0 %v2701_v33  ;;  %602 = vmatpush1.bf16.msra.mxu1 %v2706_v34 }
  0x1f   :  { %562 = vmatprep.subr.bf16.mxu0 %v2711_v35  ;;  %603 = vmatprep.subr.bf16.mxu1 %v2716_v36 }
  0x22   :  { %563 = vmatpush1.bf16.msra.mxu0 %v2725_v37  ;;  %604 = vmatpush1.bf16.msra.mxu1 %v2730_v38 }
  0x23   :  { %564 = vmatprep.subr.bf16.mxu0 %v2735_v39  ;;  %605 = vmatprep.subr.bf16.mxu1 %v2740_v40 }
  0x24   :  { %11 = vsyncpa [#allocation3], 0  ;;  %v38_v43 = vlaneseq  ;;  %v25_v45 = vld [vmem:[%s3524_s5] sm:$0xff]  ;;  %v26_v47 = vld [vmem:[%s3524_s5 + $0x8] sm:$0xff]  ;;  %vm1601_vm1 = vcmask 1040384   ;;  %vm1603_vm2 = vcmask 1041408  }
  0x25   :  { %v27_v48 = vld [vmem:[%s3524_s5 + $0x10] sm:$0xff]  ;;  %v28_v49 = vld [vmem:[%s3524_s5 + $0x18] sm:$0xff]  ;;  %vm1605_vm3 = vcmask 1042432   ;;  %vm1607_vm4 = vcmask 1043456   ;;  %vm1609_vm5 = vcmask 1044480   ;;  %vm1611_vm6 = vcmask 1045504  }
  0x26   :  { %565 = vmatpush1.bf16.msra.mxu0 %v2749_v41  ;;  %606 = vmatpush1.bf16.msra.mxu1 %v2754_v42  ;;  %v39_v44 = vshrl.u32 %v38_v43, 7  ;;  %vm1613_vm7 = vcmask 1046528   ;;  %vm2496_vm8 = vmmov 0   ;;  %vm1816_vm9 = vcmask 23552  }
  0x27   :  { %673 = vmatprep.subr.bf16.mxu0 %v2565_v10  ;;  %714 = vmatprep.subr.bf16.mxu1 %v2572_v11  ;;  %vm2031_vm10 = vcmask 57344  }
  0x28   :  { %v40_v46 = vsub.s32 0, %v39_v44 }
  0x29   :  { %583 = vmatmul.mubr.bf16.vlgmr.msra.gmra.mrb[4].mxu0 %v3528_v20  ;;  %624 = vmatmul.mubr.bf16.vlgmr.msra.gmra.mrb[4].mxu1 %v3528_v20 }
  0x2a   :  { %674 = vmatpush1.bf16.msra.mxu0 %v2577_v12  ;;  %715 = vmatpush1.bf16.msra.mxu1 %v2582_v13  ;;  %v41_v52 = vrot.slane %v25_v45, %v40_v46  ;;  %v45_v53 = vrot.slane %v26_v47, %v40_v46  ;;  %v49_v55 = vrot.slane %v27_v48, %v40_v46 }
  0x2b   :  { %675 = vmatprep.subr.bf16.mxu0 %v2589_v14  ;;  %716 = vmatprep.subr.bf16.mxu1 %v2594_v15  ;;  %v53_v56 = vrot.slane %v28_v49, %v40_v46 }
  0x2c   :  { %705 = vmatprep.mubr.bf16.mxu0 %v3528_v20  ;;  %746 = vmatprep.mubr.bf16.mxu1 %v3528_v20 }
  0x2e   :  { %676 = vmatpush1.bf16.msra.mxu0 %v2605_v16  ;;  %717 = vmatpush1.bf16.msra.mxu1 %v2610_v17 }
  0x2f   :  { %677 = vmatprep.subr.bf16.mxu0 %v2615_v18  ;;  %718 = vmatprep.subr.bf16.mxu1 %v2622_v19 }
  0x32   :  { %678 = vmatpush1.bf16.msra.mxu0 %v2629_v21  ;;  %719 = vmatpush1.bf16.msra.mxu1 %v2636_v22 }
  0x33   :  { %679 = vmatprep.subr.bf16.mxu0 %v2643_v23  ;;  %720 = vmatprep.subr.bf16.mxu1 %v2648_v24 }
  0x36   :  { %680 = vmatpush1.bf16.msra.mxu0 %v2655_v25  ;;  %721 = vmatpush1.bf16.msra.mxu1 %v2660_v26 }
  0x37   :  { %681 = vmatprep.subr.bf16.mxu0 %v2665_v27  ;;  %722 = vmatprep.subr.bf16.mxu1 %v2672_v28 }
  0x3a   :  { %682 = vmatpush1.bf16.msra.mxu0 %v2677_v29  ;;  %723 = vmatpush1.bf16.msra.mxu1 %v2684_v30 }
  0x3b   :  { %683 = vmatprep.subr.bf16.mxu0 %v2691_v31  ;;  %724 = vmatprep.subr.bf16.mxu1 %v2696_v32 }
  0x3e   :  { %684 = vmatpush1.bf16.msra.mxu0 %v2701_v33  ;;  %725 = vmatpush1.bf16.msra.mxu1 %v2706_v34 }
  0x3f   :  { %685 = vmatprep.subr.bf16.mxu0 %v2711_v35  ;;  %726 = vmatprep.subr.bf16.mxu1 %v2716_v36 }
  0x42   :  { %686 = vmatpush1.bf16.msra.mxu0 %v2725_v37  ;;  %727 = vmatpush1.bf16.msra.mxu1 %v2730_v38 }
  0x43   :  { %687 = vmatprep.subr.bf16.mxu0 %v2735_v39  ;;  %728 = vmatprep.subr.bf16.mxu1 %v2740_v40 }
  0x46   :  { %688 = vmatpush1.bf16.msra.mxu0 %v2749_v41  ;;  %729 = vmatpush1.bf16.msra.mxu1 %v2754_v42 }
  0x47   :  { %815 = vmatprep.subr.bf16.mxu0 %v2565_v10  ;;  %856 = vmatprep.subr.bf16.mxu1 %v2572_v11 }
  0xd7   :  { %v124_v50 = vpop.f32.mrb[0].mxu0  ;;  %v195_v51 = vpop.f32.mrb[0].mxu1 }
  0xd8   :  { %v126_v54 = vpop.f32.mrb[1].mxu0  ;;  %v197_v57 = vpop.f32.mrb[1].mxu1  ;;  %v125_v58 = vadd.f32 %v124_v50, %v41_v52  ;;  %v196_v61 = vadd.f32 %v195_v51, %v49_v55 }
  0xd9   :  { %v127_v59 = vadd.f32 %v126_v54, %v45_v53  ;;  %v198_v62 = vadd.f32 %v197_v57, %v53_v56 }
  0xdc   :  { %v266_v60 = vpop.f32.mrb[2].mxu0  ;;  %v337_v63 = vpop.f32.mrb[2].mxu1 }
  0xdd   :  { %v660_v0 = vrot.slane %v266_v60, 5  ;;  %v798_v1 = vrot.slane %v266_v60, 3  ;;  %v940_v2 = vrot.slane %v266_v60, 1  ;;  %v268_v3 = vpop.f32.mrb[3].mxu0  ;;  %v662_v4 = vrot.slane %v337_v63, 5  ;;  %v339_v5 = vpop.f32.mrb[3].mxu1 }
  0xde   :  { %v661_v7 = vrot.slane %v268_v3, 5  ;;  %v799_v8 = vrot.slane %v268_v3, 3  ;;  %v941_v9 = vrot.slane %v268_v3, 1  ;;  %v800_v43 = vrot.slane %v337_v63, 3 }
  0xdf   :  { %v942_v44 = vrot.slane %v337_v63, 1  ;;  %v663_v45 = vrot.slane %v339_v5, 5  ;;  %v801_v46 = vrot.slane %v339_v5, 3  ;;  %v943_v47 = vrot.slane %v339_v5, 1 }
  0xe0   :  { %v378_v48 = vrot.slane %v266_v60, 7  ;;  %v380_v49 = vrot.slane %v337_v63, 7  ;;  %v379_v50 = vrot.slane %v268_v3, 7  ;;  %v381_v51 = vrot.slane %v339_v5, 7 }
  0xe1   :  { %v2812_v52 = vadd.f32 %v660_v0, %v125_v58  ;;  %v2814_v53 = vadd.f32 %v662_v4, %v196_v61  ;;  %v2816_v54 = vadd.f32 %v661_v7, %v127_v59  ;;  %v2818_v55 = vadd.f32 %v663_v45, %v198_v62 }
  0xe2   :  { %v2820_v56 = vadd.f32 %v378_v48, %v125_v58  ;;  %v2822_v57 = vadd.f32 %v380_v49, %v196_v61  ;;  %v2824_v6 = vadd.f32 %v379_v50, %v127_v59  ;;  %v2826_v20 = vadd.f32 %v381_v51, %v198_v62 }
  0xe3   :  { %3542 = vst [vmem:[#allocation5_spill] sm:$0xff] %v2814_v53  ;;  %3543 = vst [vmem:[#allocation6_spill] sm:$0xff] %v2816_v54  ;;  %v2828_v60 = vadd.f32 %v798_v1, %v125_v58  ;;  %v2830_v63 = vadd.f32 %v800_v43, %v196_v61  ;;  %v2832_v0 = vadd.f32 %v799_v8, %v127_v59 }
  0xe4   :  { %3544 = vst [vmem:[#allocation7_spill] sm:$0xff] %v2818_v55  ;;  %3545 = vst [vmem:[#allocation8_spill] sm:$0xff] %v2822_v57  ;;  %v2834_v3 = vadd.f32 %v801_v46, %v198_v62  ;;  %v2836_v4 = vadd.f32 %v940_v2, %v125_v58  ;;  %v2838_v5 = vadd.f32 %v942_v44, %v196_v61 }
  0xe5   :  { %3546 = vst [vmem:[#allocation9_spill] sm:$0xff] %v2824_v6  ;;  %3547 = vst [vmem:[#allocation10_spill] sm:$0xff] %v2826_v20  ;;  %v2840_v7 = vadd.f32 %v941_v9, %v127_v59  ;;  %v2842_v45 = vadd.f32 %v943_v47, %v198_v62 }
  0xe6   :  { %3548 = vst [vmem:[#allocation11_spill] sm:$0xff] %v2830_v63  ;;  %3549 = vst [vmem:[#allocation12_spill] sm:$0xff] %v2834_v3 }
  0xfc   :  { %v584_v48 = vpop.f32.mrb[4].mxu0  ;;  %v625_v49 = vpop.f32.mrb[4].mxu1 }
  0xfd   :  { %v632_v50 = vadd.f32 %v584_v48, %v2820_v56  ;;  %v586_v1 = vpop.f32.mrb[5].mxu0  ;;  %v627_v51 = vpop.f32.mrb[5].mxu1  ;;  %v634_v59 = vadd.f32 %v625_v49, %v2822_v57 }
  0xfe   :  { %v633_v43 = vadd.f32 %v586_v1, %v2824_v6  ;;  %v588_v8 = vpop.f32.mrb[6].mxu0  ;;  %v629_v63 = vpop.f32.mrb[6].mxu1  ;;  %v635_v61 = vadd.f32 %v627_v51, %v2826_v20 }
  0xff   :  { %v2095_v46 = vmul.f32 -1.442695, %v632_v50  ;;  %v589_v3 = vpop.f32.mrb[7].mxu0  ;;  %v630_v58 = vpop.f32.mrb[7].mxu1  ;;  %v2097_v62 = vmul.f32 -1.442695, %v634_v59 }
 0x100   :  { %v2096_v2 = vmul.f32 -1.442695, %v633_v43 }
 0x101   :  { %2301 = vpow2.f32 %v2095_v46 }
 0x102   :  { %2303 = vpow2.f32 %v2096_v2 }
 0x103   :  { %2305 = vtanh.f32 %v635_v61  ;;  %v3551_v61 = vmov 0  }
 0x104   :  { %2307 = vpow2.f32 %v2097_v62 }
 0x10b   :  { %v2302_v9 = vpop.eup %2301 }
 0x10c   :  { %v645_v44 = vadd.f32 1.0, %v2302_v9  ;;  %v2304_v47 = vpop.eup %2303 }
 0x10d   :  { %v646_v48 = vadd.f32 1.0, %v2304_v47  ;;  %v2306_v63 = vpop.eup %2305 }
 0x10e   :  { %2309 = vrcp.f32 %v645_v44  ;;  %v2308_v50 = vpop.eup %2307 }
 0x10f   :  { %2311 = vrcp.f32 %v646_v48  ;;  %v647_v8 = vadd.f32 1.0, %v2308_v50 }
 0x111   :  { %2313 = vrcp.f32 %v647_v8 }
 0x118   :  { %v2310_v3 = vpop.eup %2309 }
 0x119   :  { %v656_v1 = vmul.f32 %v2310_v3, %v2306_v63  ;;  %v2312_v43 = vpop.eup %2311 }
 0x11a   :  { %v655_v46 = vmul.f32 0.0, %v2312_v43 }
 0x11b   :  { %v2314_v49 = vpop.eup %2313 }
 0x11c   :  { %v2848_v58 = vadd.f32 %v656_v1, %v655_v46 }
 0x11e   :  { %2315 = vtanh.f32 %v2848_v58 }
 0x128   :  { %v2316_v51 = vpop.eup %2315 }
 0x129   :  { %v2851_v2 = vmul.f32 %v2316_v51, %v2314_v49 }
 0x12b   :  { %3550 = vst [vmem:[#allocation13_spill] sm:$0xff] %v2851_v2  ;;  %v672_v59 = vpack.c.bf16 %v2851_v2, %v2851_v2 }
 0x12d   :  { %706 = vmatmul.mubr.bf16.vlgmr.msra.gmra.mrb[8].mxu0 %v672_v59  ;;  %747 = vmatmul.mubr.bf16.vlgmr.msra.gmra.mrb[8].mxu1 %v672_v59 }
 0x12e   :  { %816 = vmatpush1.bf16.msra.mxu0 %v2577_v12  ;;  %857 = vmatpush1.bf16.msra.mxu1 %v2582_v13 }
 0x12f   :  { %817 = vmatprep.subr.bf16.mxu0 %v2589_v14  ;;  %858 = vmatprep.subr.bf16.mxu1 %v2594_v15 }
 0x130   :  { %847 = vmatprep.mubr.bf16.mxu0 %v3551_v61  ;;  %888 = vmatprep.mubr.bf16.mxu1 %v3551_v61 }
 0x132   :  { %818 = vmatpush1.bf16.msra.mxu0 %v2605_v16  ;;  %859 = vmatpush1.bf16.msra.mxu1 %v2610_v17 }
 0x133   :  { %819 = vmatprep.subr.bf16.mxu0 %v2615_v18  ;;  %860 = vmatprep.subr.bf16.mxu1 %v2622_v19 }
 0x136   :  { %820 = vmatpush1.bf16.msra.mxu0 %v2629_v21  ;;  %861 = vmatpush1.bf16.msra.mxu1 %v2636_v22 }
 0x137   :  { %821 = vmatprep.subr.bf16.mxu0 %v2643_v23  ;;  %862 = vmatprep.subr.bf16.mxu1 %v2648_v24 }
 0x13a   :  { %822 = vmatpush1.bf16.msra.mxu0 %v2655_v25  ;;  %863 = vmatpush1.bf16.msra.mxu1 %v2660_v26 }
 0x13b   :  { %823 = vmatprep.subr.bf16.mxu0 %v2665_v27  ;;  %864 = vmatprep.subr.bf16.mxu1 %v2672_v28 }
 0x13e   :  { %824 = vmatpush1.bf16.msra.mxu0 %v2677_v29  ;;  %865 = vmatpush1.bf16.msra.mxu1 %v2684_v30 }
 0x13f   :  { %825 = vmatprep.subr.bf16.mxu0 %v2691_v31  ;;  %866 = vmatprep.subr.bf16.mxu1 %v2696_v32 }
 0x142   :  { %826 = vmatpush1.bf16.msra.mxu0 %v2701_v33  ;;  %867 = vmatpush1.bf16.msra.mxu1 %v2706_v34 }
 0x143   :  { %827 = vmatprep.subr.bf16.mxu0 %v2711_v35  ;;  %868 = vmatprep.subr.bf16.mxu1 %v2716_v36 }
 0x146   :  { %828 = vmatpush1.bf16.msra.mxu0 %v2725_v37  ;;  %869 = vmatpush1.bf16.msra.mxu1 %v2730_v38 }
 0x147   :  { %829 = vmatprep.subr.bf16.mxu0 %v2735_v39  ;;  %870 = vmatprep.subr.bf16.mxu1 %v2740_v40 }
 0x14a   :  { %830 = vmatpush1.bf16.msra.mxu0 %v2749_v41  ;;  %871 = vmatpush1.bf16.msra.mxu1 %v2754_v42 }
 0x14b   :  { %956 = vmatprep.subr.bf16.mxu0 %v2565_v10  ;;  %997 = vmatprep.subr.bf16.mxu1 %v2572_v11 }
 0x200   :  { %v707_v62 = vpop.f32.mrb[8].mxu0  ;;  %v748_v9 = vpop.f32.mrb[8].mxu1 }
 0x201   :  { %v759_v44 = vrot.slane %v707_v62, 7  ;;  %v709_v47 = vpop.f32.mrb[9].mxu0  ;;  %v750_v48 = vpop.f32.mrb[9].mxu1  ;;  %v761_v59 = vrot.slane %v748_v9, 7  ;;  %v791_v9 = vrot.slane %v2848_v58, 7 }
 0x202   :  { %v760_v63 = vrot.slane %v709_v47, 7  ;;  %v711_v50 = vpop.f32.mrb[10].mxu0  ;;  %v752_v3 = vpop.f32.mrb[10].mxu1  ;;  %v762_v20 = vrot.slane %v750_v48, 7 }
 0x203   :  { %v767_v1 = vadd.f32 %v759_v44, %v2812_v52  ;;  %v712_v43 = vpop.f32.mrb[11].mxu0  ;;  %v753_v8 = vpop.f32.mrb[11].mxu1  ;;  %v769_v57 = vadd.f32 %v761_v59, %v2814_v53 }
 0x204   :  { %v768_v46 = vadd.f32 %v760_v63, %v2816_v54  ;;  %v770_v62 = vadd.f32 %v762_v20, %v2818_v55 }
 0x205   :  { %v2098_v49 = vmul.f32 -1.442695, %v767_v1  ;;  %v2100_v6 = vmul.f32 -1.442695, %v769_v57 }
 0x206   :  { %v2099_v51 = vmul.f32 -1.442695, %v768_v46 }
 0x207   :  { %2317 = vpow2.f32 %v2098_v49 }
 0x208   :  { %2319 = vpow2.f32 %v2099_v51 }
 0x209   :  { %2321 = vtanh.f32 %v770_v62 }
 0x20a   :  { %2323 = vpow2.f32 %v2100_v6 }
 0x211   :  { %v2318_v47 = vpop.eup %2317 }
 0x212   :  { %v780_v50 = vadd.f32 1.0, %v2318_v47  ;;  %v2320_v3 = vpop.eup %2319 }
 0x213   :  { %v781_v44 = vadd.f32 1.0, %v2320_v3  ;;  %v2322_v63 = vpop.eup %2321 }
 0x214   :  { %2325 = vrcp.f32 %v780_v50  ;;  %v2324_v1 = vpop.eup %2323 }
 0x215   :  { %2327 = vrcp.f32 %v781_v44  ;;  %v782_v46 = vadd.f32 1.0, %v2324_v1 }
 0x217   :  { %2329 = vrcp.f32 %v782_v46 }
 0x21e   :  { %v2326_v43 = vpop.eup %2325 }
 0x21f   :  { %v794_v8 = vmul.f32 %v2326_v43, %v2322_v63  ;;  %v2328_v48 = vpop.eup %2327 }
 0x220   :  { %v793_v49 = vmul.f32 %v2328_v48, %v791_v9 }
 0x221   :  { %v2330_v20 = vpop.eup %2329 }
 0x222   :  { %v2894_v51 = vadd.f32 %v794_v8, %v793_v49 }
 0x224   :  { %2331 = vtanh.f32 %v2894_v51 }
 0x22e   :  { %v2332_v57 = vpop.eup %2331 }
 0x22f   :  { %v2897_v6 = vmul.f32 %v2332_v57, %v2330_v20 }
 0x231   :  { %3552 = vst [vmem:[#allocation14_spill] sm:$0xff] %v2897_v6  ;;  %v810_v59 = vpack.c.bf16 %v2897_v6, %v2897_v6 }
 0x233   :  { %v812_v62 = vshrl.u32 %v810_v59, 16 }
 0x235   :  { %848 = vmatmul.mubr.bf16.vlgmr.msra.gmra.mrb[12].mxu0 %v812_v62  ;;  %889 = vmatmul.mubr.bf16.vlgmr.msra.gmra.mrb[12].mxu1 %v812_v62  ;;  %v3553_v62 = vld [vmem:[#allocation11_spill] sm:$0xff] }
 0x236   :  { %957 = vmatpush1.bf16.msra.mxu0 %v2577_v12  ;;  %998 = vmatpush1.bf16.msra.mxu1 %v2582_v13 }
 0x237   :  { %958 = vmatprep.subr.bf16.mxu0 %v2589_v14  ;;  %999 = vmatprep.subr.bf16.mxu1 %v2594_v15 }
 0x238   :  { %988 = vmatprep.mubr.bf16.mxu0 %v3551_v61  ;;  %1029 = vmatprep.mubr.bf16.mxu1 %v3551_v61 }
 0x23a   :  { %959 = vmatpush1.bf16.msra.mxu0 %v2605_v16  ;;  %1000 = vmatpush1.bf16.msra.mxu1 %v2610_v17 }
 0x23b   :  { %960 = vmatprep.subr.bf16.mxu0 %v2615_v18  ;;  %1001 = vmatprep.subr.bf16.mxu1 %v2622_v19 }
 0x23e   :  { %961 = vmatpush1.bf16.msra.mxu0 %v2629_v21  ;;  %1002 = vmatpush1.bf16.msra.mxu1 %v2636_v22 }
 0x23f   :  { %962 = vmatprep.subr.bf16.mxu0 %v2643_v23  ;;  %1003 = vmatprep.subr.bf16.mxu1 %v2648_v24 }
 0x242   :  { %963 = vmatpush1.bf16.msra.mxu0 %v2655_v25  ;;  %1004 = vmatpush1.bf16.msra.mxu1 %v2660_v26 }
 0x243   :  { %964 = vmatprep.subr.bf16.mxu0 %v2665_v27  ;;  %1005 = vmatprep.subr.bf16.mxu1 %v2672_v28 }
 0x246   :  { %965 = vmatpush1.bf16.msra.mxu0 %v2677_v29  ;;  %1006 = vmatpush1.bf16.msra.mxu1 %v2684_v30 }
 0x247   :  { %966 = vmatprep.subr.bf16.mxu0 %v2691_v31  ;;  %1007 = vmatprep.subr.bf16.mxu1 %v2696_v32 }
 0x24a   :  { %967 = vmatpush1.bf16.msra.mxu0 %v2701_v33  ;;  %1008 = vmatpush1.bf16.msra.mxu1 %v2706_v34 }
 0x24b   :  { %968 = vmatprep.subr.bf16.mxu0 %v2711_v35  ;;  %1009 = vmatprep.subr.bf16.mxu1 %v2716_v36 }
 0x24e   :  { %969 = vmatpush1.bf16.msra.mxu0 %v2725_v37  ;;  %1010 = vmatpush1.bf16.msra.mxu1 %v2730_v38 }
 0x24f   :  { %970 = vmatprep.subr.bf16.mxu0 %v2735_v39  ;;  %1011 = vmatprep.subr.bf16.mxu1 %v2740_v40 }
 0x252   :  { %971 = vmatpush1.bf16.msra.mxu0 %v2749_v41  ;;  %1012 = vmatpush1.bf16.msra.mxu1 %v2754_v42 }
 0x253   :  { %1087 = vmatprep.subr.bf16.mxu0 %v2565_v10  ;;  %1128 = vmatprep.subr.bf16.mxu1 %v2572_v11 }
 0x308   :  { %v849_v58 = vpop.f32.mrb[12].mxu0  ;;  %v890_v47 = vpop.f32.mrb[12].mxu1 }
 0x309   :  { %v901_v50 = vrot.slane %v849_v58, 6  ;;  %v851_v3 = vpop.f32.mrb[13].mxu0  ;;  %v892_v44 = vpop.f32.mrb[13].mxu1  ;;  %v903_v57 = vrot.slane %v890_v47, 6  ;;  %v3554_v58 = vld [vmem:[#allocation12_spill] sm:$0xff]  ;;  %v933_v47 = vrot.slane %v2894_v51, 7 }
 0x30a   :  { %v902_v63 = vrot.slane %v851_v3, 6  ;;  %v853_v1 = vpop.f32.mrb[14].mxu0  ;;  %v894_v43 = vpop.f32.mrb[14].mxu1  ;;  %v904_v59 = vrot.slane %v892_v44, 6 }
 0x30b   :  { %v909_v9 = vadd.f32 %v901_v50, %v2828_v60  ;;  %v854_v8 = vpop.f32.mrb[15].mxu0  ;;  %v895_v48 = vpop.f32.mrb[15].mxu1  ;;  %v911_v55 = vadd.f32 %v903_v57, %v3553_v62  ;;  %v1602_v57 = vsel %vm1601_vm1, %v2851_v2, %v2897_v6  ;;  %v3561_v2 = vld [vmem:[#allocation5_spill] sm:$0xff] }
 0x30c   :  { %v910_v46 = vadd.f32 %v902_v63, %v2832_v0  ;;  %v912_v53 = vadd.f32 %v904_v59, %v3554_v58 }
 0x30d   :  { %v2101_v49 = vmul.f32 -1.442695, %v909_v9  ;;  %v2103_v54 = vmul.f32 -1.442695, %v911_v55 }
 0x30e   :  { %v2102_v20 = vmul.f32 -1.442695, %v910_v46 }
 0x30f   :  { %2333 = vpow2.f32 %v2101_v49 }
 0x310   :  { %2335 = vpow2.f32 %v2102_v20 }
 0x311   :  { %2337 = vtanh.f32 %v912_v53 }
 0x312   :  { %2339 = vpow2.f32 %v2103_v54 }
 0x319   :  { %v2334_v3 = vpop.eup %2333 }
 0x31a   :  { %v922_v1 = vadd.f32 1.0, %v2334_v3  ;;  %v2336_v43 = vpop.eup %2335 }
 0x31b   :  { %v923_v50 = vadd.f32 1.0, %v2336_v43  ;;  %v2338_v63 = vpop.eup %2337 }
 0x31c   :  { %2341 = vrcp.f32 %v922_v1  ;;  %v2340_v9 = vpop.eup %2339 }
 0x31d   :  { %2343 = vrcp.f32 %v923_v50  ;;  %v924_v46 = vadd.f32 1.0, %v2340_v9 }
 0x31f   :  { %2345 = vrcp.f32 %v924_v46 }
 0x326   :  { %v2342_v8 = vpop.eup %2341 }
 0x327   :  { %v936_v48 = vmul.f32 %v2342_v8, %v2338_v63  ;;  %v2344_v44 = vpop.eup %2343 }
 0x328   :  { %v935_v49 = vmul.f32 %v2344_v44, %v933_v47 }
 0x329   :  { %v2346_v53 = vpop.eup %2345 }
 0x32a   :  { %v2940_v20 = vadd.f32 %v936_v48, %v935_v49 }
 0x32c   :  { %2347 = vtanh.f32 %v2940_v20 }
 0x336   :  { %v2348_v54 = vpop.eup %2347 }
 0x337   :  { %v2943_v55 = vmul.f32 %v2348_v54, %v2346_v53 }
 0x339   :  { %3555 = vst [vmem:[#allocation11_spill] sm:$0xff] %v2943_v55  ;;  %v952_v51 = vpack.c.bf16 %v2943_v55, %v2943_v55  ;;  %v2952_v59 = vsel %vm1603_vm2, %v1602_v57, %v2943_v55 }
 0x33b   :  { %v954_v3 = vrot.slane %v952_v51, 1 }
 0x33d   :  { %989 = vmatmul.mubr.bf16.vlgmr.msra.gmra.mrb[16].mxu0 %v954_v3  ;;  %1030 = vmatmul.mubr.bf16.vlgmr.msra.gmra.mrb[16].mxu1 %v954_v3 }
 0x33e   :  { %1088 = vmatpush1.bf16.msra.mxu0 %v2577_v12  ;;  %1129 = vmatpush1.bf16.msra.mxu1 %v2582_v13 }
 0x33f   :  { %1089 = vmatprep.subr.bf16.mxu0 %v2589_v14  ;;  %1130 = vmatprep.subr.bf16.mxu1 %v2594_v15 }
 0x340   :  { %1119 = vmatprep.mubr.bf16.mxu0 %v3551_v61  ;;  %1160 = vmatprep.mubr.bf16.mxu1 %v3551_v61 }
 0x342   :  { %1090 = vmatpush1.bf16.msra.mxu0 %v2605_v16  ;;  %1131 = vmatpush1.bf16.msra.mxu1 %v2610_v17 }
 0x343   :  { %1091 = vmatprep.subr.bf16.mxu0 %v2615_v18  ;;  %1132 = vmatprep.subr.bf16.mxu1 %v2622_v19 }
 0x346   :  { %1092 = vmatpush1.bf16.msra.mxu0 %v2629_v21  ;;  %1133 = vmatpush1.bf16.msra.mxu1 %v2636_v22 }
 0x347   :  { %1093 = vmatprep.subr.bf16.mxu0 %v2643_v23  ;;  %1134 = vmatprep.subr.bf16.mxu1 %v2648_v24 }
 0x34a   :  { %1094 = vmatpush1.bf16.msra.mxu0 %v2655_v25  ;;  %1135 = vmatpush1.bf16.msra.mxu1 %v2660_v26 }
 0x34b   :  { %1095 = vmatprep.subr.bf16.mxu0 %v2665_v27  ;;  %1136 = vmatprep.subr.bf16.mxu1 %v2672_v28 }
 0x34e   :  { %1096 = vmatpush1.bf16.msra.mxu0 %v2677_v29  ;;  %1137 = vmatpush1.bf16.msra.mxu1 %v2684_v30 }
 0x34f   :  { %1097 = vmatprep.subr.bf16.mxu0 %v2691_v31  ;;  %1138 = vmatprep.subr.bf16.mxu1 %v2696_v32 }
 0x352   :  { %1098 = vmatpush1.bf16.msra.mxu0 %v2701_v33  ;;  %1139 = vmatpush1.bf16.msra.mxu1 %v2706_v34 }
 0x353   :  { %1099 = vmatprep.subr.bf16.mxu0 %v2711_v35  ;;  %1140 = vmatprep.subr.bf16.mxu1 %v2716_v36 }
 0x356   :  { %1100 = vmatpush1.bf16.msra.mxu0 %v2725_v37  ;;  %1141 = vmatpush1.bf16.msra.mxu1 %v2730_v38 }
 0x357   :  { %1101 = vmatprep.subr.bf16.mxu0 %v2735_v39  ;;  %1142 = vmatprep.subr.bf16.mxu1 %v2740_v40 }
 0x35a   :  { %1102 = vmatpush1.bf16.msra.mxu0 %v2749_v41  ;;  %1143 = vmatpush1.bf16.msra.mxu1 %v2754_v42 }
 0x35b   :  { %1216 = vmatprep.subr.bf16.mxu0 %v2565_v10  ;;  %1257 = vmatprep.subr.bf16.mxu1 %v2572_v11 }
 0x410   :  { %v990_v12 = vpop.f32.mrb[16].mxu0  ;;  %v1031_v13 = vpop.f32.mrb[16].mxu1 }
 0x411   :  { %v1042_v1 = vrot.slane %v990_v12, 5  ;;  %v992_v43 = vpop.f32.mrb[17].mxu0  ;;  %v1033_v50 = vpop.f32.mrb[17].mxu1  ;;  %v1044_v10 = vrot.slane %v1031_v13, 5  ;;  %v1074_v13 = vrot.slane %v2940_v20, 7 }
 0x412   :  { %v1043_v63 = vrot.slane %v992_v43, 5  ;;  %v994_v9 = vpop.f32.mrb[18].mxu0  ;;  %v1035_v8 = vpop.f32.mrb[18].mxu1  ;;  %v1045_v11 = vrot.slane %v1033_v50, 5 }
 0x413   :  { %v1050_v47 = vadd.f32 %v1042_v1, %v2836_v4  ;;  %v995_v48 = vpop.f32.mrb[19].mxu0  ;;  %v1036_v44 = vpop.f32.mrb[19].mxu1  ;;  %v1052_v54 = vadd.f32 %v1044_v10, %v2838_v5 }
 0x414   :  { %v1051_v46 = vadd.f32 %v1043_v63, %v2840_v7  ;;  %v1053_v57 = vadd.f32 %v1045_v11, %v2842_v45 }
 0x415   :  { %v2104_v49 = vmul.f32 -1.442695, %v1050_v47  ;;  %v2106_v51 = vmul.f32 -1.442695, %v1052_v54 }
 0x416   :  { %v2105_v53 = vmul.f32 -1.442695, %v1051_v46 }
 0x417   :  { %2349 = vpow2.f32 %v2104_v49 }
 0x418   :  { %2351 = vpow2.f32 %v2105_v53 }
 0x419   :  { %2353 = vtanh.f32 %v1053_v57 }
 0x41a   :  { %2355 = vpow2.f32 %v2106_v51  ;;  %v3008_v51 = vld [vmem:[%s3521_s2] ss:$16 sps:$4 sm:$0xff]  }
 0x421   :  { %v2350_v3 = vpop.eup %2349 }
 0x422   :  { %v1063_v12 = vadd.f32 1.0, %v2350_v3  ;;  %v2352_v43 = vpop.eup %2351  ;;  %v3014_v3 = vld [vmem:[%s3521_s2 + $0x8] ss:$16 sps:$4 sm:$0xff]  }
 0x423   :  { %v1064_v1 = vadd.f32 1.0, %v2352_v43  ;;  %v2354_v63 = vpop.eup %2353 }
 0x424   :  { %2357 = vrcp.f32 %v1063_v12  ;;  %v2356_v9 = vpop.eup %2355 }
 0x425   :  { %2359 = vrcp.f32 %v1064_v1  ;;  %v1065_v48 = vadd.f32 1.0, %v2356_v9 }
 0x427   :  { %2361 = vrcp.f32 %v1065_v48 }
 0x42e   :  { %v2358_v8 = vpop.eup %2357 }
 0x42f   :  { %v1077_v47 = vmul.f32 %v2358_v8, %v2354_v63  ;;  %v2360_v50 = vpop.eup %2359 }
 0x430   :  { %v1076_v44 = vmul.f32 %v2360_v50, %v1074_v13 }
 0x431   :  { %v2362_v49 = vpop.eup %2361 }
 0x432   :  { %v2993_v46 = vadd.f32 %v1077_v47, %v1076_v44 }
 0x434   :  { %2363 = vtanh.f32 %v2993_v46  ;;  %v1205_v43 = vrot.slane %v2993_v46, 7 }
 0x43e   :  { %v2364_v53 = vpop.eup %2363 }
 0x43f   :  { %v2996_v10 = vmul.f32 %v2364_v53, %v2362_v49  ;;  %v3081_v53 = vld [vmem:[%s3521_s2 + $0x24] ss:$16 sps:$4 sm:$0xff]  }
 0x441   :  { %3556 = vst [vmem:[#allocation12_spill] sm:$0xff] %v2996_v10  ;;  %v1081_v11 = vpack.c.bf16 %v2996_v10, %v2996_v10  ;;  %v3003_v20 = vsel %vm1605_vm3, %v2952_v59, %v2996_v10 }
 0x443   :  { %v1083_v54 = vshrl.u32 %v1081_v11, 16  ;;  %v3087_v11 = vld [vmem:[%s3521_s2 + $0x2c] ss:$16 sps:$4 sm:$0xff]  }
 0x445   :  { %v1085_v57 = vrot.slane %v1083_v54, 1  ;;  %v3101_v54 = vld [vmem:[%s3521_s2 + $0x28] ss:$16 sps:$4 sm:$0xff]  }
 0x447   :  { %1120 = vmatmul.mubr.bf16.vlgmr.msra.gmra.mrb[20].mxu0 %v1085_v57  ;;  %1161 = vmatmul.mubr.bf16.vlgmr.msra.gmra.mrb[20].mxu1 %v1085_v57  ;;  %v3107_v57 = vld [vmem:[%s3521_s2 + $0x44] ss:$16 sps:$4 sm:$0xff]  }
 0x448   :  { %1217 = vmatpush1.bf16.msra.mxu0 %v3008_v51  ;;  %1258 = vmatpush1.bf16.msra.mxu1 %v3014_v3 }
 0x449   :  { %1218 = vmatprep.subr.bf16.mxu0 %v2589_v14  ;;  %1259 = vmatprep.subr.bf16.mxu1 %v2594_v15  ;;  %v3050_v14 = vld [vmem:[%s3521_s2 + $0x4] ss:$16 sps:$4 sm:$0xff]   ;;  %v3056_v15 = vld [vmem:[%s3521_s2 + $0xc] ss:$16 sps:$4 sm:$0xff]  }
 0x44a   :  { %1248 = vmatprep.mubr.bf16.mxu0 %v3551_v61  ;;  %1289 = vmatprep.mubr.bf16.mxu1 %v3551_v61 }
 0x44c   :  { %1219 = vmatpush1.bf16.msra.mxu0 %v2605_v16  ;;  %1260 = vmatpush1.bf16.msra.mxu1 %v2610_v17 }
 0x44d   :  { %1220 = vmatprep.subr.bf16.mxu0 %v2615_v18  ;;  %1261 = vmatprep.subr.bf16.mxu1 %v2622_v19 }
 0x450   :  { %1221 = vmatpush1.bf16.msra.mxu0 %v2629_v21  ;;  %1262 = vmatpush1.bf16.msra.mxu1 %v2636_v22 }
 0x451   :  { %1222 = vmatprep.subr.bf16.mxu0 %v2643_v23  ;;  %1263 = vmatprep.subr.bf16.mxu1 %v2648_v24 }
 0x454   :  { %1223 = vmatpush1.bf16.msra.mxu0 %v2655_v25  ;;  %1264 = vmatpush1.bf16.msra.mxu1 %v2660_v26 }
 0x455   :  { %1224 = vmatprep.subr.bf16.mxu0 %v2665_v27  ;;  %1265 = vmatprep.subr.bf16.mxu1 %v2672_v28  ;;  %v3557_v28 = vld [vmem:[#allocation9_spill] sm:$0xff] }
 0x458   :  { %1225 = vmatpush1.bf16.msra.mxu0 %v2677_v29  ;;  %1266 = vmatpush1.bf16.msra.mxu1 %v2684_v30 }
 0x459   :  { %1226 = vmatprep.subr.bf16.mxu0 %v2691_v31  ;;  %1267 = vmatprep.subr.bf16.mxu1 %v2696_v32 }
 0x45c   :  { %1227 = vmatpush1.bf16.msra.mxu0 %v2701_v33  ;;  %1268 = vmatpush1.bf16.msra.mxu1 %v2706_v34  ;;  %v3558_v34 = vld [vmem:[#allocation8_spill] sm:$0xff] }
 0x45d   :  { %1228 = vmatprep.subr.bf16.mxu0 %v2711_v35  ;;  %1269 = vmatprep.subr.bf16.mxu1 %v2716_v36  ;;  %v3559_v36 = vld [vmem:[#allocation10_spill] sm:$0xff] }
 0x460   :  { %1229 = vmatpush1.bf16.msra.mxu0 %v2725_v37  ;;  %1270 = vmatpush1.bf16.msra.mxu1 %v2730_v38 }
 0x461   :  { %1230 = vmatprep.subr.bf16.mxu0 %v2735_v39  ;;  %1271 = vmatprep.subr.bf16.mxu1 %v2740_v40 }
 0x464   :  { %1231 = vmatpush1.bf16.msra.mxu0 %v2749_v41  ;;  %1272 = vmatpush1.bf16.msra.mxu1 %v2754_v42 }
 0x465   :  { %1347 = vmatprep.subr.bf16.mxu0 %v3050_v14  ;;  %1388 = vmatprep.subr.bf16.mxu1 %v3056_v15 }
 0x51a   :  { %v1121_v16 = vpop.f32.mrb[20].mxu0  ;;  %v1162_v17 = vpop.f32.mrb[20].mxu1 }
 0x51b   :  { %v1173_v18 = vrot.slane %v1121_v16, 4  ;;  %v1123_v19 = vpop.f32.mrb[21].mxu0  ;;  %v1164_v21 = vpop.f32.mrb[21].mxu1  ;;  %v1175_v32 = vrot.slane %v1162_v17, 4  ;;  %v3113_v16 = vld [vmem:[%s3521_s2 + $0x4c] ss:$16 sps:$4 sm:$0xff]  }
 0x51c   :  { %v1174_v22 = vrot.slane %v1123_v19, 4  ;;  %v1125_v23 = vpop.f32.mrb[22].mxu0  ;;  %v1166_v24 = vpop.f32.mrb[22].mxu1  ;;  %v1176_v33 = vrot.slane %v1164_v21, 4  ;;  %v3119_v17 = vld [vmem:[%s3521_s2 + $0x40] ss:$16 sps:$4 sm:$0xff]  }
 0x51d   :  { %v1181_v25 = vadd.f32 %v1173_v18, %v2820_v56  ;;  %v1126_v26 = vpop.f32.mrb[23].mxu0  ;;  %v1167_v27 = vpop.f32.mrb[23].mxu1  ;;  %v1183_v35 = vadd.f32 %v1175_v32, %v3558_v34  ;;  %v3125_v18 = vld [vmem:[%s3521_s2 + $0x48] ss:$16 sps:$4 sm:$0xff]   ;;  %v3131_v19 = vld [vmem:[%s3521_s2 + $0x64] ss:$16 sps:$4 sm:$0xff]  }
 0x51e   :  { %v1182_v29 = vadd.f32 %v1174_v22, %v3557_v28  ;;  %v1184_v37 = vadd.f32 %v1176_v33, %v3559_v36  ;;  %v3137_v21 = vld [vmem:[%s3521_s2 + $0x6c] ss:$16 sps:$4 sm:$0xff]   ;;  %v3143_v22 = vld [vmem:[%s3521_s2 + $0x60] ss:$16 sps:$4 sm:$0xff]   ;;  %v3149_v23 = vld [vmem:[%s3521_s2 + $0x68] ss:$16 sps:$4 sm:$0xff]  }
 0x51f   :  { %v2107_v30 = vmul.f32 -1.442695, %v1181_v25  ;;  %v2109_v38 = vmul.f32 -1.442695, %v1183_v35  ;;  %v3155_v24 = vld [vmem:[%s3521_s2 + $0x84] ss:$16 sps:$4 sm:$0xff]  }
 0x520   :  { %v2108_v31 = vmul.f32 -1.442695, %v1182_v29  ;;  %v3161_v25 = vld [vmem:[%s3521_s2 + $0x8c] ss:$16 sps:$4 sm:$0xff]   ;;  %v3167_v26 = vld [vmem:[%s3521_s2 + $0x80] ss:$16 sps:$4 sm:$0xff]  }
 0x521   :  { %2365 = vpow2.f32 %v2107_v30  ;;  %v3173_v27 = vld [vmem:[%s3521_s2 + $0x88] ss:$16 sps:$4 sm:$0xff]   ;;  %v3179_v28 = vld [vmem:[%s3521_s2 + $0xa4] ss:$16 sps:$4 sm:$0xff]   ;;  %v3185_v29 = vld [vmem:[%s3521_s2 + $0xac] ss:$16 sps:$4 sm:$0xff]  }
 0x522   :  { %2367 = vpow2.f32 %v2108_v31  ;;  %v3191_v30 = vld [vmem:[%s3521_s2 + $0xa0] ss:$16 sps:$4 sm:$0xff]   ;;  %v3197_v31 = vld [vmem:[%s3521_s2 + $0xa8] ss:$16 sps:$4 sm:$0xff]   ;;  %v3203_v32 = vld [vmem:[%s3521_s2 + $0xc4] ss:$16 sps:$4 sm:$0xff]  }
 0x523   :  { %2369 = vtanh.f32 %v1184_v37  ;;  %v3209_v33 = vld [vmem:[%s3521_s2 + $0xcc] ss:$16 sps:$4 sm:$0xff]   ;;  %v3215_v34 = vld [vmem:[%s3521_s2 + $0xc0] ss:$16 sps:$4 sm:$0xff]   ;;  %v3221_v35 = vld [vmem:[%s3521_s2 + $0xc8] ss:$16 sps:$4 sm:$0xff]  }
 0x524   :  { %2371 = vpow2.f32 %v2109_v38  ;;  %v3227_v36 = vld [vmem:[%s3521_s2 + $0xe4] ss:$16 sps:$4 sm:$0xff]   ;;  %v3233_v37 = vld [vmem:[%s3521_s2 + $0xec] ss:$16 sps:$4 sm:$0xff]   ;;  %v3239_v38 = vld [vmem:[%s3521_s2 + $0xe0] ss:$16 sps:$4 sm:$0xff]  }
 0x52b   :  { %v2366_v39 = vpop.eup %2365 }
 0x52c   :  { %v1194_v40 = vadd.f32 1.0, %v2366_v39  ;;  %v2368_v41 = vpop.eup %2367  ;;  %v3245_v39 = vld [vmem:[%s3521_s2 + $0xe8] ss:$16 sps:$4 sm:$0xff]  }
 0x52d   :  { %v1195_v42 = vadd.f32 1.0, %v2368_v41  ;;  %v2370_v56 = vpop.eup %2369 }
 0x52e   :  { %2373 = vrcp.f32 %v1194_v40  ;;  %v2372_v59 = vpop.eup %2371 }
 0x52f   :  { %2375 = vrcp.f32 %v1195_v42  ;;  %v1196_v9 = vadd.f32 1.0, %v2372_v59 }
 0x531   :  { %2377 = vrcp.f32 %v1196_v9 }
 0x538   :  { %v2374_v12 = vpop.eup %2373 }
 0x539   :  { %v1208_v1 = vmul.f32 %v2374_v12, %v2370_v56  ;;  %v2376_v63 = vpop.eup %2375 }
 0x53a   :  { %v1207_v8 = vmul.f32 %v2376_v63, %v1205_v43 }
 0x53b   :  { %v2378_v47 = vpop.eup %2377 }
 0x53c   :  { %v3064_v13 = vadd.f32 %v1208_v1, %v1207_v8 }
 0x53e   :  { %2379 = vtanh.f32 %v3064_v13 }
 0x548   :  { %v2380_v50 = vpop.eup %2379 }
 0x549   :  { %v3067_v48 = vmul.f32 %v2380_v50, %v2378_v47  ;;  %v3560_v47 = vld [vmem:[#allocation6_spill] sm:$0xff] }
 0x54b   :  { %v1212_v44 = vpack.c.bf16 %v3067_v48, %v3067_v48  ;;  %v3074_v46 = vsel %vm1607_vm4, %v3003_v20, %v3067_v48  ;;  %v3095_v20 = vld [vmem:[%s3521_s2 + $0x20] ss:$16 sps:$4 sm:$0xff]  }
 0x54d   :  { %v1214_v49 = vrot.slane %v1212_v44, 2 }
 0x54f   :  { %1249 = vmatmul.mubr.bf16.vlgmr.msra.gmra.mrb[24].mxu0 %v1214_v49  ;;  %1290 = vmatmul.mubr.bf16.vlgmr.msra.gmra.mrb[24].mxu1 %v1214_v49 }
 0x550   :  { %1348 = vmatpush1.bf16.msra.mxu0 %v3008_v51  ;;  %1389 = vmatpush1.bf16.msra.mxu1 %v3014_v3 }
 0x551   :  { %1349 = vmatprep.subr.bf16.mxu0 %v3081_v53  ;;  %1390 = vmatprep.subr.bf16.mxu1 %v3087_v11 }
 0x552   :  { %1379 = vmatprep.mubr.bf16.mxu0 %v3551_v61  ;;  %1420 = vmatprep.mubr.bf16.mxu1 %v3551_v61 }
 0x554   :  { %1350 = vmatpush1.bf16.msra.mxu0 %v3095_v20  ;;  %1391 = vmatpush1.bf16.msra.mxu1 %v3101_v54 }
 0x555   :  { %1351 = vmatprep.subr.bf16.mxu0 %v3107_v57  ;;  %1392 = vmatprep.subr.bf16.mxu1 %v3113_v16 }
 0x558   :  { %1352 = vmatpush1.bf16.msra.mxu0 %v3119_v17  ;;  %1393 = vmatpush1.bf16.msra.mxu1 %v3125_v18 }
 0x559   :  { %1353 = vmatprep.subr.bf16.mxu0 %v3131_v19  ;;  %1394 = vmatprep.subr.bf16.mxu1 %v3137_v21 }
 0x55c   :  { %1354 = vmatpush1.bf16.msra.mxu0 %v3143_v22  ;;  %1395 = vmatpush1.bf16.msra.mxu1 %v3149_v23 }
 0x55d   :  { %1355 = vmatprep.subr.bf16.mxu0 %v3155_v24  ;;  %1396 = vmatprep.subr.bf16.mxu1 %v3161_v25 }
 0x560   :  { %1356 = vmatpush1.bf16.msra.mxu0 %v3167_v26  ;;  %1397 = vmatpush1.bf16.msra.mxu1 %v3173_v27 }
 0x561   :  { %1357 = vmatprep.subr.bf16.mxu0 %v3179_v28  ;;  %1398 = vmatprep.subr.bf16.mxu1 %v3185_v29 }
 0x564   :  { %1358 = vmatpush1.bf16.msra.mxu0 %v3191_v30  ;;  %1399 = vmatpush1.bf16.msra.mxu1 %v3197_v31 }
 0x565   :  { %1359 = vmatprep.subr.bf16.mxu0 %v3203_v32  ;;  %1400 = vmatprep.subr.bf16.mxu1 %v3209_v33 }
 0x568   :  { %1360 = vmatpush1.bf16.msra.mxu0 %v3215_v34  ;;  %1401 = vmatpush1.bf16.msra.mxu1 %v3221_v35 }
 0x569   :  { %1361 = vmatprep.subr.bf16.mxu0 %v3227_v36  ;;  %1402 = vmatprep.subr.bf16.mxu1 %v3233_v37 }
 0x56c   :  { %1362 = vmatpush1.bf16.msra.mxu0 %v3239_v38  ;;  %1403 = vmatpush1.bf16.msra.mxu1 %v3245_v39 }
 0x56d   :  { %1476 = vmatprep.subr.bf16.mxu0 %v3050_v14  ;;  %1517 = vmatprep.subr.bf16.mxu1 %v3056_v15 }
 0x622   :  { %v1250_v40 = vpop.f32.mrb[24].mxu0  ;;  %v1291_v41 = vpop.f32.mrb[24].mxu1 }
 0x623   :  { %v1302_v42 = vrot.slane %v1250_v40, 3  ;;  %v1252_v56 = vpop.f32.mrb[25].mxu0  ;;  %v1293_v59 = vpop.f32.mrb[25].mxu1  ;;  %v1304_v14 = vrot.slane %v1291_v41, 3  ;;  %v3562_v40 = vld [vmem:[#allocation7_spill] sm:$0xff]  ;;  %v1334_v41 = vrot.slane %v3064_v13, 7 }
 0x624   :  { %v1303_v12 = vrot.slane %v1252_v56, 3  ;;  %v1254_v43 = vpop.f32.mrb[26].mxu0  ;;  %v1295_v1 = vpop.f32.mrb[26].mxu1  ;;  %v1305_v15 = vrot.slane %v1293_v59, 3 }
 0x625   :  { %v1310_v63 = vadd.f32 %v1302_v42, %v2812_v52  ;;  %v1255_v9 = vpop.f32.mrb[27].mxu0  ;;  %v1296_v8 = vpop.f32.mrb[27].mxu1  ;;  %v1312_v6 = vadd.f32 %v1304_v14, %v3561_v2 }
 0x626   :  { %v1311_v50 = vadd.f32 %v1303_v12, %v3560_v47  ;;  %v1313_v55 = vadd.f32 %v1305_v15, %v3562_v40  ;;  %v3320_v40 = vld [vmem:[%s3524_s5] sm:$0xff] }
 0x627   :  { %v2110_v44 = vmul.f32 -1.442695, %v1310_v63  ;;  %v2112_v10 = vmul.f32 -1.442695, %v1312_v6 }
 0x628   :  { %v2111_v49 = vmul.f32 -1.442695, %v1311_v50 }
 0x629   :  { %2381 = vpow2.f32 %v2110_v44 }
 0x62a   :  { %2383 = vpow2.f32 %v2111_v49 }
 0x62b   :  { %2385 = vtanh.f32 %v1313_v55 }
 0x62c   :  { %2387 = vpow2.f32 %v2112_v10 }
 0x633   :  { %v2382_v56 = vpop.eup %2381 }
 0x634   :  { %v1323_v43 = vadd.f32 1.0, %v2382_v56  ;;  %v2384_v1 = vpop.eup %2383  ;;  %v1837_v56 = vrot.slane %v3320_v40, 1 }
 0x635   :  { %v1324_v52 = vadd.f32 1.0, %v2384_v1  ;;  %v2386_v42 = vpop.eup %2385  ;;  %v2285_v1 = vld [vmem:[%s3522_s3 + $0x40] sm:$0xff]  }
 0x636   :  { %2389 = vrcp.f32 %v1323_v43  ;;  %v2388_v12 = vpop.eup %2387 }
 0x637   :  { %2391 = vrcp.f32 %v1324_v52  ;;  %v1325_v8 = vadd.f32 1.0, %v2388_v12  ;;  %v2286_v52 = vld [vmem:[%s3522_s3] sm:$0xff]   ;;  %v2288_v12 = vld [vmem:[%s3522_s3 + $0x8] sm:$0xff]  }
 0x639   :  { %2393 = vrcp.f32 %v1325_v8  ;;  %v2293_v8 = vld [vmem:[%s3522_s3 + $0x60] sm:$0xff]  }
 0x640   :  { %v2390_v63 = vpop.eup %2389 }
 0x641   :  { %v1337_v9 = vmul.f32 %v2390_v63, %v2386_v42  ;;  %v2392_v59 = vpop.eup %2391  ;;  %v2287_v42 = vld [vmem:[%s3522_s3 + $0x48] sm:$0xff]   ;;  %v2289_v63 = vld [vmem:[%s3522_s3 + $0x50] sm:$0xff]  }
 0x642   :  { %v1336_v2 = vmul.f32 %v2392_v59, %v1334_v41  ;;  %v2290_v41 = vld [vmem:[%s3522_s3 + $0x10] sm:$0xff]   ;;  %v2292_v59 = vld [vmem:[%s3522_s3 + $0x18] sm:$0xff]  }
 0x643   :  { %v2394_v6 = vpop.eup %2393 }
 0x644   :  { %v3255_v47 = vadd.f32 %v1337_v9, %v1336_v2  ;;  %v2291_v9 = vld [vmem:[%s3522_s3 + $0x58] sm:$0xff]   ;;  %v2294_v2 = vld [vmem:[%s3522_s3 + $0x20] sm:$0xff]  }
 0x646   :  { %2395 = vtanh.f32 %v3255_v47 }
 0x650   :  { %v2396_v55 = vpop.eup %2395 }
 0x651   :  { %v3258_v10 = vmul.f32 %v2396_v55, %v2394_v6  ;;  %v2296_v6 = vld [vmem:[%s3522_s3 + $0x28] sm:$0xff]   ;;  %v2297_v55 = vld [vmem:[%s3522_s3 + $0x70] sm:$0xff]  }
 0x653   :  { %v1341_v50 = vpack.c.bf16 %v3258_v10, %v3258_v10  ;;  %v3265_v13 = vsel %vm1609_vm5, %v3074_v46, %v3258_v10 }
 0x655   :  { %v1343_v44 = vshrl.u32 %v1341_v50, 16  ;;  %v2298_v50 = vld [vmem:[%s3522_s3 + $0x30] sm:$0xff]  }
 0x657   :  { %v1345_v49 = vrot.slane %v1343_v44, 2  ;;  %v2300_v44 = vld [vmem:[%s3522_s3 + $0x38] sm:$0xff]  }
 0x659   :  { %1380 = vmatmul.mubr.bf16.vlgmr.msra.gmra.mrb[28].mxu0 %v1345_v49  ;;  %1421 = vmatmul.mubr.bf16.vlgmr.msra.gmra.mrb[28].mxu1 %v1345_v49 }
 0x65a   :  { %1477 = vmatpush1.bf16.msra.mxu0 %v3008_v51  ;;  %1518 = vmatpush1.bf16.msra.mxu1 %v3014_v3 }
 0x65b   :  { %1478 = vmatprep.subr.bf16.mxu0 %v3081_v53  ;;  %1519 = vmatprep.subr.bf16.mxu1 %v3087_v11 }
 0x65c   :  { %1508 = vmatprep.mubr.bf16.mxu0 %v3551_v61  ;;  %1549 = vmatprep.mubr.bf16.mxu1 %v3551_v61  ;;  %v3563_v61 = vmov 0.0  }
 0x65e   :  { %1479 = vmatpush1.bf16.msra.mxu0 %v3095_v20  ;;  %1520 = vmatpush1.bf16.msra.mxu1 %v3101_v54 }
 0x65f   :  { %1480 = vmatprep.subr.bf16.mxu0 %v3107_v57  ;;  %1521 = vmatprep.subr.bf16.mxu1 %v3113_v16 }
 0x662   :  { %1481 = vmatpush1.bf16.msra.mxu0 %v3119_v17  ;;  %1522 = vmatpush1.bf16.msra.mxu1 %v3125_v18 }
 0x663   :  { %1482 = vmatprep.subr.bf16.mxu0 %v3131_v19  ;;  %1523 = vmatprep.subr.bf16.mxu1 %v3137_v21 }
 0x666   :  { %1483 = vmatpush1.bf16.msra.mxu0 %v3143_v22  ;;  %1524 = vmatpush1.bf16.msra.mxu1 %v3149_v23 }
 0x667   :  { %1484 = vmatprep.subr.bf16.mxu0 %v3155_v24  ;;  %1525 = vmatprep.subr.bf16.mxu1 %v3161_v25 }
 0x66a   :  { %1485 = vmatpush1.bf16.msra.mxu0 %v3167_v26  ;;  %1526 = vmatpush1.bf16.msra.mxu1 %v3173_v27 }
 0x66b   :  { %1486 = vmatprep.subr.bf16.mxu0 %v3179_v28  ;;  %1527 = vmatprep.subr.bf16.mxu1 %v3185_v29 }
 0x66e   :  { %1487 = vmatpush1.bf16.msra.mxu0 %v3191_v30  ;;  %1528 = vmatpush1.bf16.msra.mxu1 %v3197_v31 }
 0x66f   :  { %1488 = vmatprep.subr.bf16.mxu0 %v3203_v32  ;;  %1529 = vmatprep.subr.bf16.mxu1 %v3209_v33  ;;  %v1465_v33 = vrot.slane %v3255_v47, 7  ;;  %v2295_v47 = vld [vmem:[%s3522_s3 + $0x68] sm:$0xff]  }
 0x672   :  { %1489 = vmatpush1.bf16.msra.mxu0 %v3215_v34  ;;  %1530 = vmatpush1.bf16.msra.mxu1 %v3221_v35 }
 0x673   :  { %1490 = vmatprep.subr.bf16.mxu0 %v3227_v36  ;;  %1531 = vmatprep.subr.bf16.mxu1 %v3233_v37 }
 0x676   :  { %1491 = vmatpush1.bf16.msra.mxu0 %v3239_v38  ;;  %1532 = vmatpush1.bf16.msra.mxu1 %v3245_v39 }
 0x677   :  { %2196 = vmatprep.subr.mxu1 %v3563_v61  ;;  %2137 = vmatprep.subr.bf16.mxu0 %v2285_v1 }
 0x72c   :  { %v1381_v51 = vpop.f32.mrb[28].mxu0  ;;  %v1422_v3 = vpop.f32.mrb[28].mxu1 }
 0x72d   :  { %v1433_v46 = vrot.slane %v1381_v51, 2  ;;  %v1383_v53 = vpop.f32.mrb[29].mxu0  ;;  %v1424_v11 = vpop.f32.mrb[29].mxu1  ;;  %v1435_v23 = vrot.slane %v1422_v3, 2 }
 0x72e   :  { %v1434_v20 = vrot.slane %v1383_v53, 2  ;;  %v1385_v54 = vpop.f32.mrb[30].mxu0  ;;  %v1426_v57 = vpop.f32.mrb[30].mxu1  ;;  %v1436_v24 = vrot.slane %v1424_v11, 2 }
 0x72f   :  { %v1441_v16 = vadd.f32 %v1433_v46, %v2828_v60  ;;  %v1386_v17 = vpop.f32.mrb[31].mxu0  ;;  %v1427_v18 = vpop.f32.mrb[31].mxu1  ;;  %v1443_v25 = vadd.f32 %v1435_v23, %v3553_v62 }
 0x730   :  { %v1442_v19 = vadd.f32 %v1434_v20, %v2832_v0  ;;  %v1444_v26 = vadd.f32 %v1436_v24, %v3554_v58 }
 0x731   :  { %v2113_v21 = vmul.f32 -1.442695, %v1441_v16  ;;  %v2115_v27 = vmul.f32 -1.442695, %v1443_v25 }
 0x732   :  { %v2114_v22 = vmul.f32 -1.442695, %v1442_v19 }
 0x733   :  { %2397 = vpow2.f32 %v2113_v21 }
 0x734   :  { %2399 = vpow2.f32 %v2114_v22 }
 0x735   :  { %2401 = vtanh.f32 %v1444_v26 }
 0x736   :  { %2403 = vpow2.f32 %v2115_v27 }
 0x73d   :  { %v2398_v28 = vpop.eup %2397 }
 0x73e   :  { %v1454_v29 = vadd.f32 1.0, %v2398_v28  ;;  %v2400_v30 = vpop.eup %2399 }
 0x73f   :  { %v1455_v60 = vadd.f32 1.0, %v2400_v30  ;;  %v2402_v0 = vpop.eup %2401 }
 0x740   :  { %2405 = vrcp.f32 %v1454_v29  ;;  %v2404_v31 = vpop.eup %2403 }
 0x741   :  { %2407 = vrcp.f32 %v1455_v60  ;;  %v1456_v36 = vadd.f32 1.0, %v2404_v31 }
 0x743   :  { %2409 = vrcp.f32 %v1456_v36 }
 0x74a   :  { %v2406_v32 = vpop.eup %2405 }
 0x74b   :  { %v1468_v34 = vmul.f32 %v2406_v32, %v2402_v0  ;;  %v2408_v35 = vpop.eup %2407 }
 0x74c   :  { %v1467_v62 = vmul.f32 %v2408_v35, %v1465_v33 }
 0x74d   :  { %v2410_v58 = vpop.eup %2409 }
 0x74e   :  { %v3305_v37 = vadd.f32 %v1468_v34, %v1467_v62 }
 0x750   :  { %2411 = vtanh.f32 %v3305_v37  ;;  %v1594_v0 = vrot.slane %v3305_v37, 7  ;;  %v1622_v37 = vrot.slane %v3258_v10, 3 }
 0x75a   :  { %v2412_v38 = vpop.eup %2411 }
 0x75b   :  { %v3308_v39 = vmul.f32 %v2412_v38, %v2410_v58 }
 0x75d   :  { %v1472_v14 = vpack.c.bf16 %v3308_v39, %v3308_v39  ;;  %v3315_v15 = vsel %vm1611_vm6, %v3265_v13, %v3308_v39  ;;  %v2299_v13 = vld [vmem:[%s3522_s3 + $0x78] sm:$0xff]   ;;  %v1619_v62 = vrot.slane %v3308_v39, 5  ;;  %v3566_v39 = vld [vmem:[#allocation14_spill] sm:$0xff] }
 0x75f   :  { %v1474_v43 = vrot.slane %v1472_v14, 3  ;;  %v1625_v14 = vrot.slane %v3067_v48, 1 }
 0x761   :  { %1509 = vmatmul.mubr.bf16.vlgmr.msra.gmra.mrb[32].mxu0 %v1474_v43  ;;  %1550 = vmatmul.mubr.bf16.vlgmr.msra.gmra.mrb[32].mxu1 %v1474_v43  ;;  %v3564_v43 = vld [vmem:[#allocation12_spill] sm:$0xff] }
 0x762   :  { %2197 = vmatpush3.msk.msra.mxu1 %vm1605_vm3, %v1837_v56  ;;  %2138 = vmatpush3.bf16.msra.mxu0 %v2286_v52  ;;  %v1628_v1 = vrot.slane %v3564_v43, 7  ;;  %v1934_v43 = vld [vmem:[%s3523_s4 + $0x38] sm:$0xff] }
 0x763   :  { %2139 = vmatprep.subr.bf16.mxu0 %v2287_v42  ;;  %v3565_v42 = vld [vmem:[#allocation11_spill] sm:$0xff]  ;;  %2198 = vmatprep.mubr.msk.f32.mxu1 %vm2496_vm8, %v3563_v61 }
 0x766   :  { %2140 = vmatpush3.bf16.msra.mxu0 %v2288_v12  ;;  %v1631_v12 = vrot.slane %v3565_v42, 5  ;;  %v1952_v42 = vld [vmem:[%s3523_s4 + $0xc8] sm:$0xff] }
 0x767   :  { %2141 = vmatprep.subr.bf16.mxu0 %v2289_v63 }
 0x76a   :  { %2142 = vmatpush3.bf16.msra.mxu0 %v2290_v41  ;;  %v1634_v41 = vrot.slane %v3566_v39, 3  ;;  %v1936_v39 = vld [vmem:[%s3523_s4 + $0x48] sm:$0xff] }
 0x76b   :  { %2143 = vmatprep.subr.bf16.mxu0 %v2291_v9 }
 0x76e   :  { %2144 = vmatpush3.bf16.msra.mxu0 %v2292_v59 }
 0x76f   :  { %2145 = vmatprep.subr.bf16.mxu0 %v2293_v8 }
 0x772   :  { %2146 = vmatpush3.bf16.msra.mxu0 %v2294_v2 }
 0x773   :  { %2147 = vmatprep.subr.bf16.mxu0 %v2295_v47 }
 0x776   :  { %2148 = vmatpush3.bf16.msra.mxu0 %v2296_v6  ;;  %v1943_v6 = vld [vmem:[%s3523_s4 + $0x80] sm:$0xff] }
 0x777   :  { %2149 = vmatprep.subr.bf16.mxu0 %v2297_v55  ;;  %v1944_v55 = vld [vmem:[%s3523_s4 + $0x88] sm:$0xff] }
 0x77a   :  { %2150 = vmatpush3.bf16.msra.mxu0 %v2298_v50  ;;  %v2201_v50 = vpack.c.bf16 %v1944_v55, %v1943_v6  ;;  %v1956_v6 = vld [vmem:[%s3523_s4 + $0xe8] sm:$0xff] }
 0x77b   :  { %2151 = vmatprep.subr.bf16.mxu0 %v2299_v13 }
 0x77c   :  { %2202 = vmatprep.subr.bf16.mxu1 %v2201_v50  ;;  %v1939_v50 = vld [vmem:[%s3523_s4 + $0x60] sm:$0xff] }
 0x77e   :  { %2152 = vmatpush3.bf16.msra.mxu0 %v2300_v44 }
 0x834   :  { %v1510_v49 = vpop.f32.mrb[32].mxu0  ;;  %v1551_v51 = vpop.f32.mrb[32].mxu1 }
 0x835   :  { %v1562_v3 = vrot.slane %v1510_v49, 1  ;;  %v1512_v46 = vpop.f32.mrb[33].mxu0  ;;  %v1553_v53 = vpop.f32.mrb[33].mxu1  ;;  %v1564_v22 = vrot.slane %v1551_v51, 1 }
 0x836   :  { %v1563_v11 = vrot.slane %v1512_v46, 1  ;;  %v1514_v20 = vpop.f32.mrb[34].mxu0  ;;  %v1555_v54 = vpop.f32.mrb[34].mxu1  ;;  %v1565_v23 = vrot.slane %v1553_v53, 1 }
 0x837   :  { %v1570_v57 = vadd.f32 %v1562_v3, %v2836_v4  ;;  %v1515_v16 = vpop.f32.mrb[35].mxu0  ;;  %v1556_v17 = vpop.f32.mrb[35].mxu1  ;;  %v1572_v24 = vadd.f32 %v1564_v22, %v2838_v5 }
 0x838   :  { %v1571_v18 = vadd.f32 %v1563_v11, %v2840_v7  ;;  %v1573_v25 = vadd.f32 %v1565_v23, %v2842_v45 }
 0x839   :  { %v2116_v19 = vmul.f32 -1.442695, %v1570_v57  ;;  %v2118_v26 = vmul.f32 -1.442695, %v1572_v24 }
 0x83a   :  { %v2117_v21 = vmul.f32 -1.442695, %v1571_v18 }
 0x83b   :  { %2413 = vpow2.f32 %v2116_v19 }
 0x83c   :  { %2415 = vpow2.f32 %v2117_v21 }
 0x83d   :  { %2417 = vtanh.f32 %v1573_v25 }
 0x83e   :  { %2419 = vpow2.f32 %v2118_v26 }
 0x845   :  { %v2414_v27 = vpop.eup %2413 }
 0x846   :  { %v1583_v28 = vadd.f32 1.0, %v2414_v27  ;;  %v2416_v29 = vpop.eup %2415  ;;  %v1927_v27 = vld [vmem:[%s3523_s4] sm:$0xff] }
 0x847   :  { %v1584_v4 = vadd.f32 1.0, %v2416_v29  ;;  %v2418_v7 = vpop.eup %2417  ;;  %v1945_v29 = vld [vmem:[%s3523_s4 + $0x90] sm:$0xff] }
 0x848   :  { %2421 = vrcp.f32 %v1583_v28  ;;  %v2420_v30 = vpop.eup %2419  ;;  %v1928_v28 = vld [vmem:[%s3523_s4 + $0x8] sm:$0xff] }
 0x849   :  { %2423 = vrcp.f32 %v1584_v4  ;;  %v1585_v33 = vadd.f32 1.0, %v2420_v30  ;;  %v1946_v4 = vld [vmem:[%s3523_s4 + $0x98] sm:$0xff]  ;;  %v2203_v30 = vpack.c.bf16 %v1928_v28, %v1927_v27 }
 0x84b   :  { %2425 = vrcp.f32 %v1585_v33  ;;  %v1947_v33 = vld [vmem:[%s3523_s4 + $0xa0] sm:$0xff] }
 0x852   :  { %v2422_v60 = vpop.eup %2421 }
 0x853   :  { %v1597_v31 = vmul.f32 %v2422_v60, %v2418_v7  ;;  %v2424_v32 = vpop.eup %2423 }
 0x854   :  { %v1596_v5 = vmul.f32 %v2424_v32, %v1594_v0  ;;  %v2205_v0 = vpack.c.bf16 %v1946_v4, %v1945_v29  ;;  %v1930_v32 = vld [vmem:[%s3523_s4 + $0x18] sm:$0xff] }
 0x855   :  { %v2426_v45 = vpop.eup %2425 }
 0x856   :  { %v1598_v34 = vadd.f32 %v1597_v31, %v1596_v5  ;;  %v1929_v31 = vld [vmem:[%s3523_s4 + $0x10] sm:$0xff]  ;;  %v1948_v5 = vld [vmem:[%s3523_s4 + $0xa8] sm:$0xff] }
 0x858   :  { %2427 = vtanh.f32 %v1598_v34  ;;  %v2207_v34 = vpack.c.bf16 %v1930_v32, %v1929_v31 }
 0x862   :  { %v2428_v35 = vpop.eup %2427 }
 0x863   :  { %v1600_v36 = vmul.f32 %v2428_v35, %v2426_v45  ;;  %v2209_v45 = vpack.c.bf16 %v1948_v5, %v1947_v33  ;;  %v1931_v35 = vld [vmem:[%s3523_s4 + $0x20] sm:$0xff] }
 0x865   :  { %v1616_v58 = vrot.slane %v1600_v36, 7  ;;  %v3380_v38 = vsel %vm1613_vm7, %v3315_v15, %v1600_v36  ;;  %v3567_v15 = vld [vmem:[#allocation13_spill] sm:$0xff] }
 0x866   :  { %v1637_v59 = vrot.slane %v3567_v15, 1  ;;  %v1646_v47 = vpack.c.bf16 %v3380_v38, %v3380_v38  ;;  %v1932_v36 = vld [vmem:[%s3523_s4 + $0x28] sm:$0xff]  ;;  %v1954_v15 = vld [vmem:[%s3523_s4 + $0xd8] sm:$0xff] }
 0x867   :  { %v1639_v56 = vsel %vm1601_vm1, %v1616_v58, %v1619_v62  ;;  %v1949_v62 = vld [vmem:[%s3523_s4 + $0xb0] sm:$0xff]  ;;  %v1950_v58 = vld [vmem:[%s3523_s4 + $0xb8] sm:$0xff] }
 0x868   :  { %v1640_v52 = vsel %vm1603_vm2, %v1639_v56, %v1622_v37  ;;  %v2211_v37 = vpack.c.bf16 %v1932_v36, %v1931_v35  ;;  %v1933_v56 = vld [vmem:[%s3523_s4 + $0x30] sm:$0xff] }
 0x869   :  { %v1641_v63 = vsel %vm1605_vm3, %v1640_v52, %v1625_v14  ;;  %v2213_v14 = vpack.c.bf16 %v1950_v58, %v1949_v62  ;;  %v1951_v52 = vld [vmem:[%s3523_s4 + $0xc0] sm:$0xff] }
 0x86a   :  { %v1642_v9 = vsel %vm1607_vm4, %v1641_v63, %v1628_v1  ;;  %v2215_v1 = vpack.c.bf16 %v1934_v43, %v1933_v56  ;;  %v1935_v63 = vld [vmem:[%s3523_s4 + $0x40] sm:$0xff] }
 0x86b   :  { %v1643_v10 = vsel %vm1609_vm5, %v1642_v9, %v1631_v12  ;;  %v2217_v12 = vpack.c.bf16 %v1952_v42, %v1951_v52  ;;  %v1953_v9 = vld [vmem:[%s3523_s4 + $0xd0] sm:$0xff] }
 0x86c   :  { %v1644_v48 = vsel %vm1611_vm6, %v1643_v10, %v1634_v41  ;;  %v2219_v41 = vpack.c.bf16 %v1936_v39, %v1935_v63  ;;  %v1937_v10 = vld [vmem:[%s3523_s4 + $0x50] sm:$0xff] }
 0x86d   :  { %v3395_v8 = vsel %vm1613_vm7, %v1644_v48, %v1637_v59  ;;  %v2221_v59 = vpack.c.bf16 %v1954_v15, %v1953_v9  ;;  %v1938_v48 = vld [vmem:[%s3523_s4 + $0x58] sm:$0xff] }
 0x86e   :  { %v1647_v2 = vpack.c.bf16 %v3395_v8, %v3395_v8 }
 0x870   :  { %1808 = vmatprep.mubr.bf16.mxu0 %v1647_v2  ;;  %v2223_v2 = vpack.c.bf16 %v1938_v48, %v1937_v10 }
 0x871   :  { %1809 = vmatmul.mubr.bf16.vlgmr.msra.gmra.mrb[36].mxu0 %v1646_v47  ;;  %v1955_v47 = vld [vmem:[%s3523_s4 + $0xe0] sm:$0xff] }
 0x872   :  { %v2225_v55 = vpack.c.bf16 %v1956_v6, %v1955_v47 }
 0x944   :  { %v2153_v13 = vpop.f32.mrb[36].mxu0 }
 0x945   :  { %v2154_v44 = vpop.f32.mrb[37].mxu0 }
 0x946   :  { %v2155_v49 = vadd.f32 %v2154_v44, %v2153_v13  ;;  %v2156_v51 = vpop.f32.mrb[38].mxu0  ;;  %v1940_v13 = vld [vmem:[%s3523_s4 + $0x68] sm:$0xff] }
 0x947   :  { %v2157_v3 = vpop.f32.mrb[39].mxu0  ;;  %v2227_v44 = vpack.c.bf16 %v1940_v13, %v1939_v50  ;;  %v1958_v51 = vld [vmem:[%s3523_s4 + $0xf8] sm:$0xff] }
 0x948   :  { %v1817_v46 = vsel %vm1816_vm9, %v2155_v49, -inf }
 0x949   :  { %v1818_v53 = vrot.slane %v1817_v46, 4 }
 0x94b   :  { %v1819_v61 = vmax.f32 %v1817_v46, %v1818_v53  ;;  %v1941_v46 = vld [vmem:[%s3523_s4 + $0x70] sm:$0xff]  ;;  %v1942_v53 = vld [vmem:[%s3523_s4 + $0x78] sm:$0xff] }
 0x94d   :  { %v1820_v11 = vrot.slane %v1819_v61, 2 }
 0x94f   :  { %v1821_v20 = vmax.f32 %v1819_v61, %v1820_v11  ;;  %v2231_v61 = vpack.c.bf16 %v1942_v53, %v1941_v46 }
 0x951   :  { %v1822_v54 = vrot.slane %v1821_v20, 1 }
 0x953   :  { %v1823_v57 = vmax.f32 %v1821_v20, %v1822_v54 }
 0x955   :  { %v1824_v16 = vsub.f32 %v2155_v49, %v1823_v57  ;;  %v1957_v49 = vld [vmem:[%s3523_s4 + $0xf0] sm:$0xff]  ;;  %s2497_s4 = smov [#allocation2]  }
 0x956   :  { %v2229_v3 = vpack.c.bf16 %v1958_v51, %v1957_v49  ;;  %s2051_s28 = sshll.u32 %s2497_s4, 4  ;;  %s2052_s28 = int_to_ptr.vmem [resolvable:$true] %s2051_s28 }
 0x957   :  { %v1825_v17 = vmul.f32 1.442695, %v1824_v16  ;;  %s2470_s29 = scalar_lea.vmem %s2052_s28, 16  ;;  %s2474_s30 = scalar_lea.vmem %s2052_s28, 32 }
 0x958   :  { %p2471_p0 = scmp.ne.s32.totalorder %s2052_s28, %s2470_s29  ;;  %p2475_p1 = scmp.lt.s32.totalorder %s2052_s28, %s2052_s28 }
 0x959   :  { %2429 = vpow2.f32 %v1825_v17  ;;  %p2476_p2 = scmp.lt.s32.totalorder %s2474_s30, %s2470_s29 }
 0x95b   :  { %p2477_p3 = por %p2476_p2, %p2475_p1 }
 0x95d   :  { %p2478_p4 = pnand %p2477_p3, %p2471_p0 }
 0x963   :  { %v2430_v18 = vpop.eup %2429 }
 0x964   :  { %v1827_v19 = vsel %vm1816_vm9, %v2430_v18, 0.0 }
 0x965   :  { %v1828_v21 = vrot.slane %v1827_v19, 4 }
 0x967   :  { %v1829_v22 = vadd.f32 %v1828_v21, %v1827_v19 }
 0x969   :  { %v1830_v23 = vrot.slane %v1829_v22, 2 }
 0x96b   :  { %v1831_v24 = vadd.f32 %v1830_v23, %v1829_v22 }
 0x96d   :  { %v1832_v25 = vrot.slane %v1831_v24, 1 }
 0x96f   :  { %v1833_v26 = vadd.f32 %v1832_v25, %v1831_v24 }
 0x971   :  { %2431 = vrcp.f32 %v1833_v26 }
 0x97b   :  { %v2432_v7 = vpop.eup %2431 }
 0x97c   :  { %v1835_v60 = vmul.f32 %v2432_v7, %v2430_v18 }
 0x97e   :  { %2199 = vmatmul.mubr.msk.f32.vlgmr.msra.gmra.mrb[36].mxu1 %vm1816_vm9, %v1835_v60 }
 0x97f   :  { %2204 = vmatpush3.bf16.msra.mxu1 %v2203_v30 }
 0x980   :  { %2206 = vmatprep.subr.bf16.mxu1 %v2205_v0 }
 0x983   :  { %2208 = vmatpush3.bf16.msra.mxu1 %v2207_v34 }
 0x984   :  { %2210 = vmatprep.subr.bf16.mxu1 %v2209_v45 }
 0x987   :  { %2212 = vmatpush3.bf16.msra.mxu1 %v2211_v37 }
 0x988   :  { %2214 = vmatprep.subr.bf16.mxu1 %v2213_v14 }
 0x98b   :  { %2216 = vmatpush3.bf16.msra.mxu1 %v2215_v1 }
 0x98c   :  { %2218 = vmatprep.subr.bf16.mxu1 %v2217_v12 }
 0x98f   :  { %2220 = vmatpush3.bf16.msra.mxu1 %v2219_v41 }
 0x990   :  { %2222 = vmatprep.subr.bf16.mxu1 %v2221_v59 }
 0x993   :  { %2224 = vmatpush3.bf16.msra.mxu1 %v2223_v2 }
 0x994   :  { %2226 = vmatprep.subr.bf16.mxu1 %v2225_v55 }
 0x997   :  { %2228 = vmatpush3.bf16.msra.mxu1 %v2227_v44 }
 0x998   :  { %2230 = vmatprep.subr.bf16.mxu1 %v2229_v3 }
 0x99b   :  { %2232 = vmatpush3.bf16.msra.mxu1 %v2231_v61 }
 0xa51   :  { %v1909_v11 = vpop.f32.mrb[36].mxu1 }
 0xa52   :  { %v1913_v20 = vmul.f32 %v1909_v11, %v3380_v38  ;;  %v1920_v54 = vmul.f32 %v1909_v11, %v3395_v8  ;;  %v2200_v57 = vpop.f32.mrb[37].mxu1  ;;  %v1959_v38 = vrot.slane %v3320_v40, 4 }
 0xa54   :  { %v1914_v16 = vrot.slane %v1913_v20, 4  ;;  %v1921_v17 = vrot.slane %v1920_v54, 4 }
 0xa56   :  { %v1915_v18 = vadd.f32 %v1914_v16, %v1913_v20  ;;  %v1922_v19 = vadd.f32 %v1921_v17, %v1920_v54 }
 0xa58   :  { %v1916_v21 = vrot.slane %v1915_v18, 2  ;;  %v1923_v22 = vrot.slane %v1922_v19, 2 }
 0xa5a   :  { %v1917_v23 = vadd.f32 %v1916_v21, %v1915_v18  ;;  %v1924_v24 = vadd.f32 %v1923_v22, %v1922_v19 }
 0xa5c   :  { %v1918_v25 = vrot.slane %v1917_v23, 1  ;;  %v1925_v26 = vrot.slane %v1924_v24, 1 }
 0xa5e   :  { %v1926_v27 = vadd.f32 %v1925_v26, %v1924_v24  ;;  %v1919_v28 = vadd.f32 %v1918_v25, %v1917_v23 }
 0xa60   :  { %2025 = vmatprep.mubr.f32.mxu1 %v1926_v27 }
 0xa61   :  { %2026 = vmatmul.mubr.f32.vlgmr.msra.gmra.mrb[38].mxu1 %v1919_v28 }
 0xb34   :  { %v2193_v29 = vpop.f32.mrb[38].mxu1 }
 0xb35   :  { %v2194_v4 = vpop.f32.mrb[39].mxu1 }
 0xb36   :  { %v2195_v8 = vadd.f32 %v2194_v4, %v2193_v29 }
 0xb38   :  { %v2028_v7 = vadd.f32 %v2195_v8, %v1959_v38 }
 0xb3a   :  { %v2032_v30 = vsel %vm2031_vm10, %v2028_v7, -inf }
 0xb3b   :  { %2033 = vmax.xlane.f32.xlu0 %v2032_v30 }
 0xbc8   :  { %v2034_v60 = vpop.xlane.xlu0 %2033 }
 0xbc9   :  { %v2035_v0 = vsub.f32 %v2028_v7, %v2034_v60 }
 0xbcb   :  { %v2036_v31 = vmul.f32 1.442695, %v2035_v0 }
 0xbcd   :  { %2433 = vpow2.f32 %v2036_v31 }
 0xbd7   :  { %v2434_v32 = vpop.eup %2433 }
 0xbd8   :  { %v2038_v33 = vsel %vm2031_vm10, %v2434_v32, 0.0 }
 0xbd9   :  { %2039 = vadd.xlane.f32.xlu0 %v2038_v33 }
 0xc66   :  { %v2040_v5 = vpop.xlane.xlu0 %2039 }
 0xc67   :  { %2435 = vlog2.f32 %v2040_v5 }
 0xc71   :  { %v2436_v34 = vpop.eup %2435 }
 0xc72   :  { %v2042_v40 = vmul.f32 0.6931472, %v2436_v34 }
 0xc74   :  { %v2043_v45 = vsub.f32 %v2035_v0, %v2042_v40 }
 0xc76   :  { %2044 = vst.msk [vmem:[#allocation2] sm:$0x1] %vm2031_vm10, %v2043_v45 }
 0xc77   :  { %2481 = shalt.err (!%p2478_p4)
}
 0xc78   :  { %s2482_s9 = scalar_lea.hbm %s3525_s6, 16 }
 0xc79   :  { %p2483_p5 = scmp.ne.s32.totalorder %s3525_s6, %s2482_s9  ;;  %p2486_p6 = scmp.lt.u32.totalorder %s2482_s9, %s3525_s6 }
 0xc7b   :  { %p2488_p7 = pnand %p2486_p6, %p2483_p5 }
 0xc7d   :  { %2491 = shalt.err (!%p2488_p7)
}
 0xc7e   :  { %2054 = dma.vmem_to_hbm [thread:$0]  %s2052_s28, 16, %s3525_s6, [#allocation3]  }
 0xc7f   :  { %2492 = dma.done.wait [#allocation3], 16  }
 0xc80   :  { %2493 = vsyncadd [#allocation3], 4294967280 }
 0xc81   :  { %2058 = vsyncpa [#allocation3], 1 }

</bundles_post_ra>
